<compile_context>
chip_gen: v7x
topology: tpu7x:2x2x1
jax: 0.10.0
libtpu: 0.0.40
codegen_flags: <defaults>
</compile_context>

<pallas_src>
import functools

import jax
import jax.numpy as jnp
from jax import lax
from jax.experimental import pallas as pl
from jax.experimental.pallas import tpu as pltpu


def _relu(x):
    return jnp.maximum(x, 0.0)


def pixelcnn_kernel(res_num,
                    x2_ref, win_ref,
                    w11_ref, b11_ref, w3_ref, b3_ref, w12_ref, b12_ref,
                    wo1_ref, bo1_ref, wo2_ref, bo2_ref,
                    o_ref):
    bf16 = jnp.bfloat16
    # in_cnn (kernel [2,1], no bias) folded into one matmul, then ReLU.
    x = _relu(jnp.dot(x2_ref[...].astype(bf16), win_ref[...],
                      preferred_element_type=jnp.float32))
    # Residual stack of 1x1 convs (statically unrolled; res_num is small).
    # bf16 at the MXU inputs, f32 accumulation + f32 elementwise.
    for i in range(res_num):
        h = _relu(jnp.dot(x.astype(bf16), w11_ref[i],
                          preferred_element_type=jnp.float32) + b11_ref[i])
        h = _relu(jnp.dot(h.astype(bf16), w3_ref[i],
                          preferred_element_type=jnp.float32) + b3_ref[i])
        h = _relu(jnp.dot(h.astype(bf16), w12_ref[i],
                          preferred_element_type=jnp.float32) + b12_ref[i])
        x = x + h
    # out_cnn1 -> ReLU -> out_cnn2
    x = _relu(jnp.dot(x.astype(bf16), wo1_ref[...],
                      preferred_element_type=jnp.float32) + bo1_ref[...])
    o_ref[...] = (jnp.dot(x.astype(bf16), wo2_ref[...],
                          preferred_element_type=jnp.float32)
                  + bo2_ref[...]).astype(o_ref.dtype)


def _pick_tile_p(P, tile_p_request):
    """Biggest tile (<= request) that still leaves >= 2 grid steps (v7x: 2 TCs)."""
    req = min(max(int(tile_p_request), 128), 2048)
    tile_p = 128
    for cand in (2048, 1024, 512, 256, 128):
        if cand <= req and (P + cand - 1) // cand >= 2:
            tile_p = cand
            break
    return tile_p


def local_pixelcnn_forward(x, kp, *, res_num, tile_p=1024):
    """x: NCHW float32.  kp: kernel-layout params dict.  Returns NCHW output."""
    N, Cin, H, W = x.shape
    K2p, C = kp["w_in_mat"].shape          # K2p = 2*Cin padded up to mult of 8
    Cout = kp["wo2"].shape[-1]
    K2 = 2 * Cin
    assert K2p >= K2
    Hp = H - 1  # valid conv with kH=2, kW=1

    # Build (P, K2p): each output pixel sees rows h and h+1 of the input,
    # zero-padded on the channel axis to the sublane-aligned width K2p.
    xt = jnp.transpose(x, (0, 2, 3, 1)).astype(jnp.float32)     # NHWC
    top = xt[:, :-1, :, :].reshape(-1, Cin)
    bot = xt[:, 1:, :, :].reshape(-1, Cin)
    x2 = jnp.concatenate([top, bot], axis=-1)
    x2 = jnp.pad(x2, ((0, 0), (0, K2p - K2)))
    P = x2.shape[0]

    tp = _pick_tile_p(P, tile_p)
    P_pad = ((P + tp - 1) // tp) * tp
    x2 = jnp.pad(x2, ((0, P_pad - P), (0, 0)))
    grid = (P_pad // tp,)

    # Scoped-VMEM budget: double-buffered I/O tiles + (double-buffered) bf16
    # weights + generous headroom for live f32/bf16 activations inside the
    # kernel.  Floor at 32 MiB (> v5e's 16 MiB default), cap at v7x physical.
    w_bytes = 2 * (K2p * C + 3 * res_num * C * C + C * C + C * Cout)  # bf16
    b_bytes = 4 * (3 * res_num * C + C + Cout)
    io_bytes = 2 * 4 * tp * (K2p + Cout)
    act_bytes = 6 * 4 * tp * C
    vmem_limit = io_bytes + 2 * (w_bytes + b_bytes) + act_bytes + (8 << 20)
    vmem_limit = int(min(max(vmem_limit, 32 << 20), 64 << 20))

    kernel = functools.partial(pixelcnn_kernel, res_num)

    out = pl.pallas_call(
        kernel,
        out_shape=jax.ShapeDtypeStruct((P_pad, Cout), jnp.float32),
        grid_spec=pltpu.PrefetchScalarGridSpec(
            num_scalar_prefetch=0,
            grid=grid,
            in_specs=[
                pl.BlockSpec((tp, K2p), lambda i: (i, 0)),             # x2 tile
                pl.BlockSpec((K2p, C), lambda i: (0, 0)),              # in_cnn w
                pl.BlockSpec((res_num, C, C), lambda i: (0, 0, 0)),    # w11
                pl.BlockSpec((res_num, 1, C), lambda i: (0, 0, 0)),    # b11
                pl.BlockSpec((res_num, C, C), lambda i: (0, 0, 0)),    # w3
                pl.BlockSpec((res_num, 1, C), lambda i: (0, 0, 0)),    # b3
                pl.BlockSpec((res_num, C, C), lambda i: (0, 0, 0)),    # w12
                pl.BlockSpec((res_num, 1, C), lambda i: (0, 0, 0)),    # b12
                pl.BlockSpec((C, C), lambda i: (0, 0)),                # out_cnn1 w
                pl.BlockSpec((1, C), lambda i: (0, 0)),                # out_cnn1 b
                pl.BlockSpec((C, Cout), lambda i: (0, 0)),             # out_cnn2 w
                pl.BlockSpec((1, Cout), lambda i: (0, 0)),             # out_cnn2 b
            ],
            out_specs=pl.BlockSpec((tp, Cout), lambda i: (i, 0)),
        ),
        compiler_params=pltpu.CompilerParams(
            dimension_semantics=("parallel",),
            vmem_limit_bytes=vmem_limit),
    )(x2, kp["w_in_mat"], kp["w11"], kp["b11"], kp["w3"], kp["b3"],
      kp["w12"], kp["b12"], kp["wo1"], kp["bo1"], kp["wo2"], kp["bo2"])

    out = out[:P]                                              # drop padding
    out = out.reshape(N, Hp, W, Cout).transpose(0, 3, 1, 2)    # back to NCHW
    return out


def make_params(key, *, in_channels, channels, out_channels, res_num):
    """Deterministic synthetic weights in PyTorch conv layout (OIHW), plus the
    equivalent matmul-layout params (weights in bf16, biases in f32)."""
    keys = jax.random.split(key, 8 + 6 * res_num)
    scale = 0.1

    def nrm(k, shape):
        return scale * jax.random.normal(k, shape, dtype=jnp.float32)

    ki = iter(keys)
    torch_p = {
        "in_w": nrm(next(ki), (channels, in_channels, 2, 1)),
        "w11": jnp.stack([nrm(next(ki), (channels, channels, 1, 1))
                          for _ in range(res_num)]),
        "b11": jnp.stack([nrm(next(ki), (channels,)) for _ in range(res_num)]),
        "w3": jnp.stack([nrm(next(ki), (channels, channels, 1, 1))
                         for _ in range(res_num)]),
        "b3": jnp.stack([nrm(next(ki), (channels,)) for _ in range(res_num)]),
        "w12": jnp.stack([nrm(next(ki), (channels, channels, 1, 1))
                          for _ in range(res_num)]),
        "b12": jnp.stack([nrm(next(ki), (channels,)) for _ in range(res_num)]),
        "wo1": nrm(next(ki), (channels, channels, 1, 1)),
        "bo1": nrm(next(ki), (channels,)),
        "wo2": nrm(next(ki), (out_channels, channels, 1, 1)),
        "bo2": nrm(next(ki), (out_channels,)),
    }

    # Kernel (matmul) layout: y = x @ W with W = conv_weight[:, :, 0, 0].T.
    # in_cnn folded as [w_top ; w_bot], K dim zero-padded up to a multiple of 8.
    bf16 = jnp.bfloat16
    K2 = 2 * in_channels
    K2p = ((K2 + 7) // 8) * 8
    w_in = torch_p["in_w"]
    w_in_mat = jnp.concatenate([w_in[:, :, 0, 0].T, w_in[:, :, 1, 0].T], axis=0)
    w_in_mat = jnp.pad(w_in_mat, ((0, K2p - K2), (0, 0)))
    kernel_p = {
        "w_in_mat": w_in_mat.astype(bf16),                               # (K2p, C)
        "w11": jnp.transpose(torch_p["w11"][:, :, :, 0, 0], (0, 2, 1)).astype(bf16),
        "b11": torch_p["b11"][:, None, :],
        "w3": jnp.transpose(torch_p["w3"][:, :, :, 0, 0], (0, 2, 1)).astype(bf16),
        "b3": torch_p["b3"][:, None, :],
        "w12": jnp.transpose(torch_p["w12"][:, :, :, 0, 0], (0, 2, 1)).astype(bf16),
        "b12": torch_p["b12"][:, None, :],
        "wo1": torch_p["wo1"][:, :, 0, 0].T.astype(bf16),
        "bo1": torch_p["bo1"][None, :],
        "wo2": torch_p["wo2"][:, :, 0, 0].T.astype(bf16),
        "bo2": torch_p["bo2"][None, :],
    }
    return torch_p, kernel_p


def ref_forward(x, tp, res_num):
    """Plain-JAX f32 reference mirroring the PyTorch forward (train=True)."""
    dn = ("NCHW", "OIHW", "NCHW")

    def conv(z, w):
        return lax.conv_general_dilated(z, w, (1, 1), "VALID",
                                        dimension_numbers=dn)

    def conv1x1(z, w, b):
        return conv(z, w) + b[None, :, None, None]

    y = _relu(conv(x, tp["in_w"]))
    for i in range(res_num):
        h = _relu(conv1x1(y, tp["w11"][i], tp["b11"][i]))
        h = _relu(conv1x1(h, tp["w3"][i], tp["b3"][i]))
        h = _relu(conv1x1(h, tp["w12"][i], tp["b12"][i]))
        y = y + h
    y = _relu(conv1x1(y, tp["wo1"], tp["bo1"]))
    y = conv1x1(y, tp["wo2"], tp["bo2"])
    return y


if __name__ == "__main__":
    # Small, module-consistent shapes.
    N, Cin, H, W = 2, 3, 16, 16
    channels, out_channels, res_num = 128, 128, 2

    key = jax.random.PRNGKey(0)
    kx, kp_key = jax.random.split(key)
    x = jax.random.normal(kx, (N, Cin, H, W), dtype=jnp.float32)

    torch_p, kernel_p = make_params(kp_key, in_channels=Cin, channels=channels,
                                    out_channels=out_channels, res_num=res_num)

    out = local_pixelcnn_forward(x, kernel_p, res_num=res_num)
    out = jax.block_until_ready(out)

    ref = ref_forward(x, torch_p, res_num)
    assert out.shape == (N, out_channels, H - 1, W), out.shape
    # Tolerance loosened deliberately: the kernel uses a bf16 MXU datapath
    # (f32 accumulation) while the reference is pure f32.
    max_err = float(jnp.max(jnp.abs(out - ref)))
    assert jnp.allclose(out, ref, rtol=5e-2, atol=5e-2), max_err

    print("KERNEL_OK")
</pallas_src>

<mosaic_0001>
module attributes {stable_mosaic.version = 11 : i64} {
  func.func @pixelcnn_kernel(%arg0: i32, %arg1: memref<256x8xf32, #tpu.memory_space<vmem>>, %arg2: memref<8x128xbf16, #tpu.memory_space<vmem>>, %arg3: memref<2x128x128xbf16, #tpu.memory_space<vmem>>, %arg4: memref<2x1x128xf32, #tpu.memory_space<vmem>>, %arg5: memref<2x128x128xbf16, #tpu.memory_space<vmem>>, %arg6: memref<2x1x128xf32, #tpu.memory_space<vmem>>, %arg7: memref<2x128x128xbf16, #tpu.memory_space<vmem>>, %arg8: memref<2x1x128xf32, #tpu.memory_space<vmem>>, %arg9: memref<128x128xbf16, #tpu.memory_space<vmem>>, %arg10: memref<1x128xf32, #tpu.memory_space<vmem>>, %arg11: memref<128x128xbf16, #tpu.memory_space<vmem>>, %arg12: memref<1x128xf32, #tpu.memory_space<vmem>>, %arg13: memref<256x128xf32, #tpu.memory_space<vmem>>) attributes {dimension_semantics = [#tpu.dimension_semantics<parallel>], iteration_bounds = array<i64: 2>, scalar_prefetch = 0 : i64, scratch_operands = 0 : i64, tpu.core_type = #tpu.core_type<tc>, window_params = [{transform_indices = @transform_0, window_bounds = array<i64: 256, 8>}, {pipeline_mode = #tpu.pipeline_mode<synchronous>, transform_indices = @transform_1, window_bounds = array<i64: 8, 128>}, {pipeline_mode = #tpu.pipeline_mode<synchronous>, transform_indices = @transform_2, window_bounds = array<i64: 2, 128, 128>}, {pipeline_mode = #tpu.pipeline_mode<synchronous>, transform_indices = @transform_3, window_bounds = array<i64: 2, 1, 128>}, {pipeline_mode = #tpu.pipeline_mode<synchronous>, transform_indices = @transform_4, window_bounds = array<i64: 2, 128, 128>}, {pipeline_mode = #tpu.pipeline_mode<synchronous>, transform_indices = @transform_5, window_bounds = array<i64: 2, 1, 128>}, {pipeline_mode = #tpu.pipeline_mode<synchronous>, transform_indices = @transform_6, window_bounds = array<i64: 2, 128, 128>}, {pipeline_mode = #tpu.pipeline_mode<synchronous>, transform_indices = @transform_7, window_bounds = array<i64: 2, 1, 128>}, {pipeline_mode = #tpu.pipeline_mode<synchronous>, transform_indices = @transform_8, window_bounds = array<i64: 128, 128>}, {pipeline_mode = #tpu.pipeline_mode<synchronous>, transform_indices = @transform_9, window_bounds = array<i64: 1, 128>}, {pipeline_mode = #tpu.pipeline_mode<synchronous>, transform_indices = @transform_10, window_bounds = array<i64: 128, 128>}, {pipeline_mode = #tpu.pipeline_mode<synchronous>, transform_indices = @transform_11, window_bounds = array<i64: 1, 128>}, {transform_indices = @transform_12, window_bounds = array<i64: 256, 128>}]} {
    %c0 = arith.constant 0 : index
    %c0_0 = arith.constant 0 : index
    %0 = vector.load %arg1[%c0, %c0_0] : memref<256x8xf32, #tpu.memory_space<vmem>>, vector<256x8xf32>
    %1 = arith.truncf %0 : vector<256x8xf32> to vector<256x8xbf16>
    %c0_1 = arith.constant 0 : index
    %c0_2 = arith.constant 0 : index
    %2 = vector.load %arg2[%c0_1, %c0_2] : memref<8x128xbf16, #tpu.memory_space<vmem>>, vector<8x128xbf16>
    %cst = arith.constant dense<0.000000e+00> : vector<256x128xf32>
    %3 = tpu.matmul %1, %2, %cst {dimension_numbers = #tpu.dot_dimension_numbers<[1], [0], [0], [1], [0, 0, 1, 1], [], []>} : vector<256x8xbf16>, vector<8x128xbf16>, vector<256x128xf32> -> vector<256x128xf32>
    %cst_3 = arith.constant 0.000000e+00 : f32
    %4 = vector.broadcast %cst_3 : f32 to vector<256x128xf32>
    %5 = arith.maximumf %3, %4 : vector<256x128xf32>
    %6 = arith.truncf %5 : vector<256x128xf32> to vector<256x128xbf16>
    %c0_4 = arith.constant 0 : index
    %c0_5 = arith.constant 0 : index
    %c0_6 = arith.constant 0 : index
    %7 = vector.load %arg3[%c0_4, %c0_5, %c0_6] : memref<2x128x128xbf16, #tpu.memory_space<vmem>>, vector<1x128x128xbf16>
    %8 = vector.shape_cast %7 : vector<1x128x128xbf16> to vector<128x128xbf16>
    %cst_7 = arith.constant dense<0.000000e+00> : vector<256x128xf32>
    %9 = tpu.matmul %6, %8, %cst_7 {dimension_numbers = #tpu.dot_dimension_numbers<[1], [0], [0], [1], [0, 0, 1, 1], [], []>} : vector<256x128xbf16>, vector<128x128xbf16>, vector<256x128xf32> -> vector<256x128xf32>
    %c0_8 = arith.constant 0 : index
    %c0_9 = arith.constant 0 : index
    %c0_10 = arith.constant 0 : index
    %10 = vector.load %arg4[%c0_8, %c0_9, %c0_10] : memref<2x1x128xf32, #tpu.memory_space<vmem>>, vector<1x1x128xf32>
    %11 = vector.shape_cast %10 : vector<1x1x128xf32> to vector<1x128xf32>
    %12 = vector.broadcast %11 : vector<1x128xf32> to vector<256x128xf32>
    %13 = arith.addf %9, %12 : vector<256x128xf32>
    %cst_11 = arith.constant 0.000000e+00 : f32
    %14 = vector.broadcast %cst_11 : f32 to vector<256x128xf32>
    %15 = arith.maximumf %13, %14 : vector<256x128xf32>
    %16 = arith.truncf %15 : vector<256x128xf32> to vector<256x128xbf16>
    %c0_12 = arith.constant 0 : index
    %c0_13 = arith.constant 0 : index
    %c0_14 = arith.constant 0 : index
    %17 = vector.load %arg5[%c0_12, %c0_13, %c0_14] : memref<2x128x128xbf16, #tpu.memory_space<vmem>>, vector<1x128x128xbf16>
    %18 = vector.shape_cast %17 : vector<1x128x128xbf16> to vector<128x128xbf16>
    %cst_15 = arith.constant dense<0.000000e+00> : vector<256x128xf32>
    %19 = tpu.matmul %16, %18, %cst_15 {dimension_numbers = #tpu.dot_dimension_numbers<[1], [0], [0], [1], [0, 0, 1, 1], [], []>} : vector<256x128xbf16>, vector<128x128xbf16>, vector<256x128xf32> -> vector<256x128xf32>
    %c0_16 = arith.constant 0 : index
    %c0_17 = arith.constant 0 : index
    %c0_18 = arith.constant 0 : index
    %20 = vector.load %arg6[%c0_16, %c0_17, %c0_18] : memref<2x1x128xf32, #tpu.memory_space<vmem>>, vector<1x1x128xf32>
    %21 = vector.shape_cast %20 : vector<1x1x128xf32> to vector<1x128xf32>
    %22 = vector.broadcast %21 : vector<1x128xf32> to vector<256x128xf32>
    %23 = arith.addf %19, %22 : vector<256x128xf32>
    %cst_19 = arith.constant 0.000000e+00 : f32
    %24 = vector.broadcast %cst_19 : f32 to vector<256x128xf32>
    %25 = arith.maximumf %23, %24 : vector<256x128xf32>
    %26 = arith.truncf %25 : vector<256x128xf32> to vector<256x128xbf16>
    %c0_20 = arith.constant 0 : index
    %c0_21 = arith.constant 0 : index
    %c0_22 = arith.constant 0 : index
    %27 = vector.load %arg7[%c0_20, %c0_21, %c0_22] : memref<2x128x128xbf16, #tpu.memory_space<vmem>>, vector<1x128x128xbf16>
    %28 = vector.shape_cast %27 : vector<1x128x128xbf16> to vector<128x128xbf16>
    %cst_23 = arith.constant dense<0.000000e+00> : vector<256x128xf32>
    %29 = tpu.matmul %26, %28, %cst_23 {dimension_numbers = #tpu.dot_dimension_numbers<[1], [0], [0], [1], [0, 0, 1, 1], [], []>} : vector<256x128xbf16>, vector<128x128xbf16>, vector<256x128xf32> -> vector<256x128xf32>
    %c0_24 = arith.constant 0 : index
    %c0_25 = arith.constant 0 : index
    %c0_26 = arith.constant 0 : index
    %30 = vector.load %arg8[%c0_24, %c0_25, %c0_26] : memref<2x1x128xf32, #tpu.memory_space<vmem>>, vector<1x1x128xf32>
    %31 = vector.shape_cast %30 : vector<1x1x128xf32> to vector<1x128xf32>
    %32 = vector.broadcast %31 : vector<1x128xf32> to vector<256x128xf32>
    %33 = arith.addf %29, %32 : vector<256x128xf32>
    %cst_27 = arith.constant 0.000000e+00 : f32
    %34 = vector.broadcast %cst_27 : f32 to vector<256x128xf32>
    %35 = arith.maximumf %33, %34 : vector<256x128xf32>
    %36 = arith.addf %5, %35 : vector<256x128xf32>
    %37 = arith.truncf %36 : vector<256x128xf32> to vector<256x128xbf16>
    %c1 = arith.constant 1 : index
    %c0_28 = arith.constant 0 : index
    %c0_29 = arith.constant 0 : index
    %38 = vector.load %arg3[%c1, %c0_28, %c0_29] : memref<2x128x128xbf16, #tpu.memory_space<vmem>>, vector<1x128x128xbf16>
    %39 = vector.shape_cast %38 : vector<1x128x128xbf16> to vector<128x128xbf16>
    %cst_30 = arith.constant dense<0.000000e+00> : vector<256x128xf32>
    %40 = tpu.matmul %37, %39, %cst_30 {dimension_numbers = #tpu.dot_dimension_numbers<[1], [0], [0], [1], [0, 0, 1, 1], [], []>} : vector<256x128xbf16>, vector<128x128xbf16>, vector<256x128xf32> -> vector<256x128xf32>
    %c1_31 = arith.constant 1 : index
    %c0_32 = arith.constant 0 : index
    %c0_33 = arith.constant 0 : index
    %41 = vector.load %arg4[%c1_31, %c0_32, %c0_33] : memref<2x1x128xf32, #tpu.memory_space<vmem>>, vector<1x1x128xf32>
    %42 = vector.shape_cast %41 : vector<1x1x128xf32> to vector<1x128xf32>
    %43 = vector.broadcast %42 : vector<1x128xf32> to vector<256x128xf32>
    %44 = arith.addf %40, %43 : vector<256x128xf32>
    %cst_34 = arith.constant 0.000000e+00 : f32
    %45 = vector.broadcast %cst_34 : f32 to vector<256x128xf32>
    %46 = arith.maximumf %44, %45 : vector<256x128xf32>
    %47 = arith.truncf %46 : vector<256x128xf32> to vector<256x128xbf16>
    %c1_35 = arith.constant 1 : index
    %c0_36 = arith.constant 0 : index
    %c0_37 = arith.constant 0 : index
    %48 = vector.load %arg5[%c1_35, %c0_36, %c0_37] : memref<2x128x128xbf16, #tpu.memory_space<vmem>>, vector<1x128x128xbf16>
    %49 = vector.shape_cast %48 : vector<1x128x128xbf16> to vector<128x128xbf16>
    %cst_38 = arith.constant dense<0.000000e+00> : vector<256x128xf32>
    %50 = tpu.matmul %47, %49, %cst_38 {dimension_numbers = #tpu.dot_dimension_numbers<[1], [0], [0], [1], [0, 0, 1, 1], [], []>} : vector<256x128xbf16>, vector<128x128xbf16>, vector<256x128xf32> -> vector<256x128xf32>
    %c1_39 = arith.constant 1 : index
    %c0_40 = arith.constant 0 : index
    %c0_41 = arith.constant 0 : index
    %51 = vector.load %arg6[%c1_39, %c0_40, %c0_41] : memref<2x1x128xf32, #tpu.memory_space<vmem>>, vector<1x1x128xf32>
    %52 = vector.shape_cast %51 : vector<1x1x128xf32> to vector<1x128xf32>
    %53 = vector.broadcast %52 : vector<1x128xf32> to vector<256x128xf32>
    %54 = arith.addf %50, %53 : vector<256x128xf32>
    %cst_42 = arith.constant 0.000000e+00 : f32
    %55 = vector.broadcast %cst_42 : f32 to vector<256x128xf32>
    %56 = arith.maximumf %54, %55 : vector<256x128xf32>
    %57 = arith.truncf %56 : vector<256x128xf32> to vector<256x128xbf16>
    %c1_43 = arith.constant 1 : index
    %c0_44 = arith.constant 0 : index
    %c0_45 = arith.constant 0 : index
    %58 = vector.load %arg7[%c1_43, %c0_44, %c0_45] : memref<2x128x128xbf16, #tpu.memory_space<vmem>>, vector<1x128x128xbf16>
    %59 = vector.shape_cast %58 : vector<1x128x128xbf16> to vector<128x128xbf16>
    %cst_46 = arith.constant dense<0.000000e+00> : vector<256x128xf32>
    %60 = tpu.matmul %57, %59, %cst_46 {dimension_numbers = #tpu.dot_dimension_numbers<[1], [0], [0], [1], [0, 0, 1, 1], [], []>} : vector<256x128xbf16>, vector<128x128xbf16>, vector<256x128xf32> -> vector<256x128xf32>
    %c1_47 = arith.constant 1 : index
    %c0_48 = arith.constant 0 : index
    %c0_49 = arith.constant 0 : index
    %61 = vector.load %arg8[%c1_47, %c0_48, %c0_49] : memref<2x1x128xf32, #tpu.memory_space<vmem>>, vector<1x1x128xf32>
    %62 = vector.shape_cast %61 : vector<1x1x128xf32> to vector<1x128xf32>
    %63 = vector.broadcast %62 : vector<1x128xf32> to vector<256x128xf32>
    %64 = arith.addf %60, %63 : vector<256x128xf32>
    %cst_50 = arith.constant 0.000000e+00 : f32
    %65 = vector.broadcast %cst_50 : f32 to vector<256x128xf32>
    %66 = arith.maximumf %64, %65 : vector<256x128xf32>
    %67 = arith.addf %36, %66 : vector<256x128xf32>
    %68 = arith.truncf %67 : vector<256x128xf32> to vector<256x128xbf16>
    %c0_51 = arith.constant 0 : index
    %c0_52 = arith.constant 0 : index
    %69 = vector.load %arg9[%c0_51, %c0_52] : memref<128x128xbf16, #tpu.memory_space<vmem>>, vector<128x128xbf16>
    %cst_53 = arith.constant dense<0.000000e+00> : vector<256x128xf32>
    %70 = tpu.matmul %68, %69, %cst_53 {dimension_numbers = #tpu.dot_dimension_numbers<[1], [0], [0], [1], [0, 0, 1, 1], [], []>} : vector<256x128xbf16>, vector<128x128xbf16>, vector<256x128xf32> -> vector<256x128xf32>
    %c0_54 = arith.constant 0 : index
    %c0_55 = arith.constant 0 : index
    %71 = vector.load %arg10[%c0_54, %c0_55] : memref<1x128xf32, #tpu.memory_space<vmem>>, vector<1x128xf32>
    %72 = vector.broadcast %71 : vector<1x128xf32> to vector<256x128xf32>
    %73 = arith.addf %70, %72 : vector<256x128xf32>
    %cst_56 = arith.constant 0.000000e+00 : f32
    %74 = vector.broadcast %cst_56 : f32 to vector<256x128xf32>
    %75 = arith.maximumf %73, %74 : vector<256x128xf32>
    %76 = arith.truncf %75 : vector<256x128xf32> to vector<256x128xbf16>
    %c0_57 = arith.constant 0 : index
    %c0_58 = arith.constant 0 : index
    %77 = vector.load %arg11[%c0_57, %c0_58] : memref<128x128xbf16, #tpu.memory_space<vmem>>, vector<128x128xbf16>
    %cst_59 = arith.constant dense<0.000000e+00> : vector<256x128xf32>
    %78 = tpu.matmul %76, %77, %cst_59 {dimension_numbers = #tpu.dot_dimension_numbers<[1], [0], [0], [1], [0, 0, 1, 1], [], []>} : vector<256x128xbf16>, vector<128x128xbf16>, vector<256x128xf32> -> vector<256x128xf32>
    %c0_60 = arith.constant 0 : index
    %c0_61 = arith.constant 0 : index
    %79 = vector.load %arg12[%c0_60, %c0_61] : memref<1x128xf32, #tpu.memory_space<vmem>>, vector<1x128xf32>
    %80 = vector.broadcast %79 : vector<1x128xf32> to vector<256x128xf32>
    %81 = arith.addf %78, %80 : vector<256x128xf32>
    %c0_62 = arith.constant 0 : index
    %c0_63 = arith.constant 0 : index
    %82 = vector.load %arg13[%c0_62, %c0_63] : memref<256x128xf32, #tpu.memory_space<vmem>>, vector<256x128xf32>
    tpu.vector_store %arg13[%c0_62, %c0_63], %81 {strides = array<i32>} : memref<256x128xf32, #tpu.memory_space<vmem>>, vector<256x128xf32>,
    return
  }
  func.func @transform_0(%arg0: i32) -> (i32, i32) {
    %c0_i32 = arith.constant 0 : i32
    %c0_i32_0 = arith.constant 0 : i32
    return %arg0, %c0_i32 : i32, i32
  }
  func.func @transform_1(%arg0: i32) -> (i32, i32) {
    %c0_i32 = arith.constant 0 : i32
    %c0_i32_0 = arith.constant 0 : i32
    %c0_i32_1 = arith.constant 0 : i32
    return %c0_i32, %c0_i32_0 : i32, i32
  }
  func.func @transform_2(%arg0: i32) -> (i32, i32, i32) {
    %c0_i32 = arith.constant 0 : i32
    %c0_i32_0 = arith.constant 0 : i32
    %c0_i32_1 = arith.constant 0 : i32
    %c0_i32_2 = arith.constant 0 : i32
    return %c0_i32, %c0_i32_0, %c0_i32_1 : i32, i32, i32
  }
  func.func @transform_3(%arg0: i32) -> (i32, i32, i32) {
    %c0_i32 = arith.constant 0 : i32
    %c0_i32_0 = arith.constant 0 : i32
    %c0_i32_1 = arith.constant 0 : i32
    %c0_i32_2 = arith.constant 0 : i32
    return %c0_i32, %c0_i32_0, %c0_i32_1 : i32, i32, i32
  }
  func.func @transform_4(%arg0: i32) -> (i32, i32, i32) {
    %c0_i32 = arith.constant 0 : i32
    %c0_i32_0 = arith.constant 0 : i32
    %c0_i32_1 = arith.constant 0 : i32
    %c0_i32_2 = arith.constant 0 : i32
    return %c0_i32, %c0_i32_0, %c0_i32_1 : i32, i32, i32
  }
  func.func @transform_5(%arg0: i32) -> (i32, i32, i32) {
    %c0_i32 = arith.constant 0 : i32
    %c0_i32_0 = arith.constant 0 : i32
    %c0_i32_1 = arith.constant 0 : i32
    %c0_i32_2 = arith.constant 0 : i32
    return %c0_i32, %c0_i32_0, %c0_i32_1 : i32, i32, i32
  }
  func.func @transform_6(%arg0: i32) -> (i32, i32, i32) {
    %c0_i32 = arith.constant 0 : i32
    %c0_i32_0 = arith.constant 0 : i32
    %c0_i32_1 = arith.constant 0 : i32
    %c0_i32_2 = arith.constant 0 : i32
    return %c0_i32, %c0_i32_0, %c0_i32_1 : i32, i32, i32
  }
  func.func @transform_7(%arg0: i32) -> (i32, i32, i32) {
    %c0_i32 = arith.constant 0 : i32
    %c0_i32_0 = arith.constant 0 : i32
    %c0_i32_1 = arith.constant 0 : i32
    %c0_i32_2 = arith.constant 0 : i32
    return %c0_i32, %c0_i32_0, %c0_i32_1 : i32, i32, i32
  }
  func.func @transform_8(%arg0: i32) -> (i32, i32) {
    %c0_i32 = arith.constant 0 : i32
    %c0_i32_0 = arith.constant 0 : i32
    %c0_i32_1 = arith.constant 0 : i32
    return %c0_i32, %c0_i32_0 : i32, i32
  }
  func.func @transform_9(%arg0: i32) -> (i32, i32) {
    %c0_i32 = arith.constant 0 : i32
    %c0_i32_0 = arith.constant 0 : i32
    %c0_i32_1 = arith.constant 0 : i32
    return %c0_i32, %c0_i32_0 : i32, i32
  }
  func.func @transform_10(%arg0: i32) -> (i32, i32) {
    %c0_i32 = arith.constant 0 : i32
    %c0_i32_0 = arith.constant 0 : i32
    %c0_i32_1 = arith.constant 0 : i32
    return %c0_i32, %c0_i32_0 : i32, i32
  }
  func.func @transform_11(%arg0: i32) -> (i32, i32) {
    %c0_i32 = arith.constant 0 : i32
    %c0_i32_0 = arith.constant 0 : i32
    %c0_i32_1 = arith.constant 0 : i32
    return %c0_i32, %c0_i32_0 : i32, i32
  }
  func.func @transform_12(%arg0: i32) -> (i32, i32) {
    %c0_i32 = arith.constant 0 : i32
    %c0_i32_0 = arith.constant 0 : i32
    return %arg0, %c0_i32 : i32, i32
  }
}

</mosaic_0001>

<bundles_post_ra>
// kernel: tpu_custom_call.1
= control target key start
LH: loop header
LB: loop body
LE: loop exit
PB: predicated region body
PF: predicated region fallthrough
CT: control target
= control target key end

     0   :  { %s5151_s0 = inlined_call_operand.vmem [shape: f32[512,8], index: 0, kind: input, shape index: {}]   ;;  %s5152_s1 = inlined_call_operand.vmem [shape: bf16[8,128], index: 1, kind: input, shape index: {}]   ;;  %s5153_s2 = inlined_call_operand.vmem [shape: bf16[2,128,128], index: 2, kind: input, shape index: {}]   ;;  %s5154_s3 = inlined_call_operand.vmem [shape: f32[2,1,128], index: 3, kind: input, shape index: {}]   ;;  %s5155_s4 = inlined_call_operand.vmem [shape: bf16[2,128,128], index: 4, kind: input, shape index: {}]   ;;  %s5156_s5 = inlined_call_operand.vmem [shape: f32[2,1,128], index: 5, kind: input, shape index: {}]   ;;  %s5157_s6 = inlined_call_operand.vmem [shape: bf16[2,128,128], index: 6, kind: input, shape index: {}]   ;;  %s5158_s7 = inlined_call_operand.vmem [shape: f32[2,1,128], index: 7, kind: input, shape index: {}]   ;;  %s5159_s8 = inlined_call_operand.vmem [shape: bf16[128,128], index: 8, kind: input, shape index: {}]   ;;  %s5160_s9 = inlined_call_operand.vmem [shape: f32[1,128], index: 9, kind: input, shape index: {}]   ;;  %s5161_s10 = inlined_call_operand.vmem [shape: bf16[128,128], index: 10, kind: input, shape index: {}]   ;;  %s5162_s11 = inlined_call_operand.vmem [shape: f32[1,128], index: 11, kind: input, shape index: {}]   ;;  %s5163_s12 = inlined_call_operand.hbm [shape: f32[512,128], index: 12, kind: output, shape index: {}]  }
   0x1   :  { %5184 = sst [smem:[#allocation5_spill]] %s5151_s0 }
   0x2   :  { %17 = vsyncpa [#allocation3], 0 }
   0x3   :  { %19 = vsyncpa [#allocation3 + $0x1], 0  ;;  %s4117_s21 = smov 0   ;;  %s4119_s22 = smov 0  }
   0x4   :  { %s4121_s23 = smov 0   ;;  %s4123_s24 = smov 0  }
   0x5 LB: > { %s4138_s25 = sadd.s32 4294967295, %s4047_s24   ;;  %s3097_s26 = sadd.s32 4294967294, %s4047_s24   ;;  %s4047_s24 = sphi %s4123_s24, %s5211_s24   ;;  %s4043_s23 = sphi %s4121_s23, %s5210_s23   ;;  %s4039_s22 = sphi %s4119_s22, %s5209_s22   ;;  %s4035_s21 = sphi %s4117_s21, %s5208_s21  }
   0x6   : > { %s4142_s27 = sadd.s32 1, %s4047_s24   ;;  %s289_s28 = sadd.s32 1, %s4043_s23 }
   0x7   : > { %s286_s29 = ssub.s32 %s4047_s24, %s4142_s27  ;;  %p299_p0 = scmp.ne.s32.totalorder %s4043_s23, %s4039_s22 }
   0x8   : > { %p287_p1 = scmp.eq.s32.totalorder %s286_s29, 0  ;;  %p300_p2 = scmp.eq.s32.totalorder %s4138_s25, 1 }
   0x9   : > { %p305_p3 = scmp.ne.s32.totalorder %s4039_s22, %s4035_s21  ;;  %p306_p4 = scmp.eq.s32.totalorder %s3097_s26, 1 }
   0xa   : > { %s4153_s30 = scalar_select %p287_p1, %s4043_s23, %s289_s28  }
   0xb   : > { %p4155_p5 = por %p300_p2, %p299_p0  ;;  %p4159_p6 = por %p306_p4, %p305_p3 }
   0xc   : > { %p3100_p7 = scmp.ge.s32.totalorder %s4047_s24, 1  ;;  %p366_p8 = scmp.lt.s32.totalorder %s4047_s24, 3 }
   0xe   : > { %p367_p9 = pnand %p3100_p7, %p366_p8 }
   0xf   : > { %v464_v0 = vld [vmem:[%s5152_s1] sm:$0xf] (!%p367_p9)  ;;  %vm514_vm0 = vcmask (!%p367_p9), 1043456   ;;  %s3102_s17 = sshll.u32 (!%p367_p9), %s4138_s25, 5  ;;  %s5187_s0 = sld [smem:[#allocation5_spill]] (!%p367_p9)  ;;  %vm465_vm1 = vcmask (!%p367_p9), 64512  }
  0x10   : > { %370 = sbr.rel (%p367_p9) target bundleno = 2096 (0x830), region = 68  ;;  %v3921_v1 = vld [vmem:[%s5153_s2] sm:$0xff] (!%p367_p9)   ;;  %3878 = vmatprep.subr.msk.bf16.mxu0 (!%p367_p9), %vm514_vm0, %v464_v0  ;;  %v516_v2 = vsel (!%p367_p9), %vm514_vm0, %v464_v0, 0  ;;  %p409_p10 = scmp.lt.s32.totalorder (!%p367_p9), %s3102_s17, 63  ;;  %3879 = vmatprep.subr.msk.bf16.mxu1 (!%p367_p9), %vm514_vm0, %v464_v0  ;;  %v3922_v24 = vld [vmem:[%s5153_s2 + $0x8] sm:$0xff] (!%p367_p9)   ;;  %v3923_v30 = vld [vmem:[%s5153_s2 + $0x10] sm:$0xff] (!%p367_p9)  }
  0x11   : > { %3459 = vmatpush3.bf16.msra.mxu0 (!%p367_p9), %v516_v2  ;;  %3877 = vmatpush3.bf16.msra.mxu1 (!%p367_p9), %v516_v2  ;;  %v3924_v38 = vld [vmem:[%s5153_s2 + $0x18] sm:$0xff] (!%p367_p9)   ;;  %v3925_v46 = vld [vmem:[%s5153_s2 + $0x20] sm:$0xff] (!%p367_p9)   ;;  %v3926_v50 = vld [vmem:[%s5153_s2 + $0x28] sm:$0xff] (!%p367_p9)   ;;  %s4049_s15 = smov (!%p367_p9), [#allocation2]  }
  0x12   : > { %3492 = vmatprep.subr.bf16.mxu1 (!%p367_p9), %v3921_v1  ;;  %v3927_v56 = vld [vmem:[%s5153_s2 + $0x30] sm:$0xff] (!%p367_p9)   ;;  %v3928_v57 = vld [vmem:[%s5153_s2 + $0x38] sm:$0xff] (!%p367_p9)   ;;  %v3929_v58 = vld [vmem:[%s5155_s4] sm:$0xff] (!%p367_p9)  }
  0x13   : > { %v3930_v59 = vld [vmem:[%s5155_s4 + $0x8] sm:$0xff] (!%p367_p9)   ;;  %3540 = vmatprep.subr.bf16.mxu0 (!%p367_p9), %v3929_v58  ;;  %v3931_v60 = vld [vmem:[%s5155_s4 + $0x10] sm:$0xff] (!%p367_p9)   ;;  %v3932_v61 = vld [vmem:[%s5155_s4 + $0x18] sm:$0xff] (!%p367_p9)  }
  0x14   : > { %v3933_v62 = vld [vmem:[%s5155_s4 + $0x20] sm:$0xff] (!%p367_p9)   ;;  %v3934_v63 = vld [vmem:[%s5155_s4 + $0x28] sm:$0xff] (!%p367_p9)  }
  0x17   : > { %s5213_s17 = smov (!%p409_p10, %s3102_s17), 63 }
  0x18   : > { %s3103_s20 = sshll.u32 %s5213_s17, 3  ;;  %s3248_s17 = sshll.u32 %s4138_s25, 12 }
  0x19   : > { %s4175_s29 = scalar_lea.vmem %s5187_s0, %s3103_s20  ;;  %s405_s20 = sand.u32 1, %s4039_s22  }
  0x1a   : > { %v416_v3 = vld [vmem:[%s4175_s29] sm:$0xff]  ;;  %v417_v4 = vld [vmem:[%s4175_s29 + $0x8] sm:$0xff]  ;;  %v418_v5 = vld [vmem:[%s4175_s29 + $0x10] sm:$0xff]  ;;  %s3101_s26 = sshll.u32 %s405_s20, 8  ;;  %s5110_s25 = scalar_lea.sflag [#allocation3], %s405_s20 }
  0x1b   : > { %v448_v6 = vpack.c.bf16 %v417_v4, %v416_v3  ;;  %v419_v7 = vld [vmem:[%s4175_s29 + $0x18] sm:$0xff]  ;;  %v420_v8 = vld [vmem:[%s4175_s29 + $0x20] sm:$0xff]  ;;  %v421_v9 = vld [vmem:[%s4175_s29 + $0x28] sm:$0xff]  ;;  %s5035_s16 = scalar_lea.vmem [#allocation2], %s3101_s26  ;;  %s5100_s26 = scalar_lea.hbm %s5163_s12, %s3248_s17 }
  0x1c   : > { %v449_v10 = vpack.c.bf16 %v419_v7, %v418_v5  ;;  %v450_v11 = vpack.c.bf16 %v421_v9, %v420_v8  ;;  %v422_v12 = vld [vmem:[%s4175_s29 + $0x30] sm:$0xff]  ;;  %v423_v13 = vld [vmem:[%s4175_s29 + $0x38] sm:$0xff]  ;;  %v424_v14 = vld [vmem:[%s4175_s29 + $0x40] sm:$0xff]  ;;  %s3035_s18 = sshll.u32 %s5035_s16, 4  ;;  %s3989_s17 = sshll.u32 %s4049_s15, 4  ;;  %s5102_s18 = int_to_ptr.vmem [resolvable:$true] %s3035_s18  ;;  %s3990_s17 = int_to_ptr.vmem [resolvable:$false] %s3989_s17 }
  0x1d   : > { %3460 = vmatprep.mubr.msk.bf16.mxu0 %vm465_vm1, %v448_v6  ;;  %v425_v15 = vld [vmem:[%s4175_s29 + $0x48] sm:$0xff]  ;;  %v432_v16 = vld [vmem:[%s4175_s29 + $0x80] sm:$0xff]  ;;  %v434_v19 = vld [vmem:[%s4175_s29 + $0x90] sm:$0xff]  ;;  %v451_v25 = vpack.c.bf16 %v423_v13, %v422_v12  ;;  %s3985_s28 = scalar_lea.vmem %s5102_s18, 4096  ;;  %s3991_s19 = scalar_lea.vmem %s3990_s17, 8192 }
  0x1e   : > { %3461 = vmatmul.mubr.msk.bf16.vlgmr.msra.gmra.mrb[0].mxu0 %vm465_vm1, %v449_v10  ;;  %v433_v17 = vld [vmem:[%s4175_s29 + $0x88] sm:$0xff]  ;;  %v435_v20 = vld [vmem:[%s4175_s29 + $0x98] sm:$0xff]  ;;  %v436_v21 = vld [vmem:[%s4175_s29 + $0xa0] sm:$0xff]  ;;  %v452_v27 = vpack.c.bf16 %v425_v15, %v424_v14  ;;  %p3986_p11 = scmp.ne.s32.totalorder %s5102_s18, %s3985_s28  ;;  %p3992_p0 = scmp.lt.s32.totalorder %s5102_s18, %s3990_s17 }
  0x1f   : > { %3464 = vmatprep.mubr.msk.bf16.mxu0 %vm465_vm1, %v450_v11  ;;  %v456_v18 = vpack.c.bf16 %v433_v17, %v432_v16  ;;  %v457_v22 = vpack.c.bf16 %v435_v20, %v434_v19  ;;  %v437_v23 = vld [vmem:[%s4175_s29 + $0xa8] sm:$0xff]  ;;  %v438_v28 = vld [vmem:[%s4175_s29 + $0xb0] sm:$0xff]  ;;  %v439_v29 = vld [vmem:[%s4175_s29 + $0xb8] sm:$0xff]  ;;  %3541 = vmatpush3.bf16.msra.mxu0 %v3929_v58  ;;  %p3993_p1 = scmp.lt.s32.totalorder %s3991_s19, %s3985_s28 }
  0x20   : > { %v458_v26 = vpack.c.bf16 %v437_v23, %v436_v21  ;;  %v440_v31 = vld [vmem:[%s4175_s29 + $0xc0] sm:$0xff]  ;;  %v441_v32 = vld [vmem:[%s4175_s29 + $0xc8] sm:$0xff]  ;;  %v426_v33 = vld [vmem:[%s4175_s29 + $0x50] sm:$0xff]  ;;  %v459_v37 = vpack.c.bf16 %v439_v29, %v438_v28  ;;  %3542 = vmatprep.subr.bf16.mxu0 %v3930_v59  ;;  %p3987_p12 = pnand %p3986_p11, %p4155_p5 }
  0x21   : > { %3476 = vmatprep.mubr.msk.bf16.mxu1 %vm465_vm1, %v456_v18  ;;  %v427_v34 = vld [vmem:[%s4175_s29 + $0x58] sm:$0xff]  ;;  %v428_v35 = vld [vmem:[%s4175_s29 + $0x60] sm:$0xff]  ;;  %v429_v36 = vld [vmem:[%s4175_s29 + $0x68] sm:$0xff]  ;;  %v460_v39 = vpack.c.bf16 %v441_v32, %v440_v31  ;;  %p3994_p2 = por %p3993_p1, %p3992_p0 }
  0x22   : > { %3477 = vmatmul.mubr.msk.bf16.vlgmr.msra.gmra.mrb[0].mxu1 %vm465_vm1, %v457_v22  ;;  %v453_v40 = vpack.c.bf16 %v427_v34, %v426_v33  ;;  %v442_v41 = vld [vmem:[%s4175_s29 + $0xd0] sm:$0xff]  ;;  %v443_v42 = vld [vmem:[%s4175_s29 + $0xd8] sm:$0xff]  ;;  %v454_v43 = vpack.c.bf16 %v429_v36, %v428_v35  ;;  %v444_v44 = vld [vmem:[%s4175_s29 + $0xe0] sm:$0xff]  ;;  %p3988_p13 = pneg %p3987_p12 }
  0x23   : > { %3480 = vmatprep.mubr.msk.bf16.mxu1 %vm465_vm1, %v458_v26  ;;  %3493 = vmatpush3.bf16.msra.mxu1 %v3921_v1  ;;  %v445_v45 = vld [vmem:[%s4175_s29 + $0xe8] sm:$0xff]  ;;  %v430_v47 = vld [vmem:[%s4175_s29 + $0x70] sm:$0xff]  ;;  %v431_v48 = vld [vmem:[%s4175_s29 + $0x78] sm:$0xff]  ;;  %v461_v49 = vpack.c.bf16 %v443_v42, %v442_v41 }
  0x24   : > { %3494 = vmatprep.subr.bf16.mxu1 %v3922_v24  ;;  %v462_v51 = vpack.c.bf16 %v445_v45, %v444_v44  ;;  %v455_v52 = vpack.c.bf16 %v431_v48, %v430_v47  ;;  %v446_v53 = vld [vmem:[%s4175_s29 + $0xf0] sm:$0xff]  ;;  %v447_v54 = vld [vmem:[%s4175_s29 + $0xf8] sm:$0xff]  ;;  %3543 = vmatpush3.bf16.msra.mxu0 %v3930_v59  ;;  %p3995_p3 = pnand %p3994_p2, %p3988_p13 }
  0x25   : > { %v463_v55 = vpack.c.bf16 %v447_v54, %v446_v53  ;;  %3544 = vmatprep.subr.bf16.mxu0 %v3931_v60 }
  0x26   : > { %3465 = vmatmul.mubr.msk.bf16.gmra.mrb[4].mxu0 %vm465_vm1, %v451_v25 }
  0x27   : > { %3468 = vmatprep.mubr.msk.bf16.mxu0 %vm465_vm1, %v452_v27  ;;  %3495 = vmatpush3.bf16.msra.mxu1 %v3922_v24 }
  0x28   : > { %3496 = vmatprep.subr.bf16.mxu1 %v3923_v30  ;;  %3545 = vmatpush3.bf16.msra.mxu0 %v3931_v60 }
  0x29   : > { %3546 = vmatprep.subr.bf16.mxu0 %v3932_v61 }
  0x2a   : > { %3481 = vmatmul.mubr.msk.bf16.gmra.mrb[4].mxu1 %vm465_vm1, %v459_v37 }
  0x2b   : > { %3484 = vmatprep.mubr.msk.bf16.mxu1 %vm465_vm1, %v460_v39  ;;  %3497 = vmatpush3.bf16.msra.mxu1 %v3923_v30 }
  0x2c   : > { %3498 = vmatprep.subr.bf16.mxu1 %v3924_v38  ;;  %3547 = vmatpush3.bf16.msra.mxu0 %v3932_v61 }
  0x2d   : > { %3548 = vmatprep.subr.bf16.mxu0 %v3933_v62 }
  0x2e   : > { %3469 = vmatmul.mubr.msk.bf16.gmra.mrb[8].mxu0 %vm465_vm1, %v453_v40 }
  0x2f   : > { %3472 = vmatprep.mubr.msk.bf16.mxu0 %vm465_vm1, %v454_v43  ;;  %3499 = vmatpush3.bf16.msra.mxu1 %v3924_v38 }
  0x30   : > { %3500 = vmatprep.subr.bf16.mxu1 %v3925_v46  ;;  %3549 = vmatpush3.bf16.msra.mxu0 %v3933_v62 }
  0x31   : > { %3550 = vmatprep.subr.bf16.mxu0 %v3934_v63 }
  0x32   : > { %3485 = vmatmul.mubr.msk.bf16.gmra.mrb[8].mxu1 %vm465_vm1, %v461_v49 }
  0x33   : > { %3488 = vmatprep.mubr.msk.bf16.mxu1 %vm465_vm1, %v462_v51  ;;  %3501 = vmatpush3.bf16.msra.mxu1 %v3925_v46 }
  0x34   : > { %3502 = vmatprep.subr.bf16.mxu1 %v3926_v50  ;;  %3551 = vmatpush3.bf16.msra.mxu0 %v3934_v63 }
  0x36   : > { %3473 = vmatmul.mubr.msk.bf16.gmra.mrb[12].mxu0 %vm465_vm1, %v455_v52 }
  0x37   : > { %3503 = vmatpush3.bf16.msra.mxu1 %v3926_v50 }
  0x38   : > { %3504 = vmatprep.subr.bf16.mxu1 %v3927_v56 }
  0x3a   : > { %3489 = vmatmul.mubr.msk.bf16.gmra.mrb[12].mxu1 %vm465_vm1, %v463_v55 }
  0x3b   : > { %3505 = vmatpush3.bf16.msra.mxu1 %v3927_v56 }
  0x3c   : > { %3506 = vmatprep.subr.bf16.mxu1 %v3928_v57 }
  0x3f   : > { %3507 = vmatpush3.bf16.msra.mxu1 %v3928_v57 }
  0xf1   : > { %v4264_v0 = vpop.f32.mrb[0].mxu0 }
  0xf2   : > { %v4266_v1 = vpop.f32.mrb[1].mxu0  ;;  %v681_v7 = vmax.f32 %v4264_v0, 0.0 }
  0xf3   : > { %v4268_v2 = vpop.f32.mrb[2].mxu0  ;;  %v679_v5 = vmax.f32 %v4266_v1, 0.0 }
  0xf4   : > { %v682_v3 = vmax.f32 %v4268_v2, 0.0  ;;  %v4271_v4 = vpop.f32.mrb[3].mxu0 }
  0xf5   : > { %v680_v6 = vmax.f32 %v4271_v4, 0.0  ;;  %v4276_v8 = vpop.f32.mrb[0].mxu1 }
  0xf6   : > { %v4282_v10 = vpop.f32.mrb[1].mxu1  ;;  %v712_v11 = vpack.c.bf16 %v682_v3, %v681_v7  ;;  %v5176_v61 = vmax.f32 %v4276_v8, 0.0 }
  0xf7   : > { %v711_v9 = vpack.c.bf16 %v680_v6, %v679_v5  ;;  %v4288_v12 = vpop.f32.mrb[2].mxu1  ;;  %v5178_v45 = vmax.f32 %v4282_v10, 0.0 }
  0xf8   : > { %v4292_v14 = vpop.f32.mrb[3].mxu1  ;;  %v5179_v62 = vmax.f32 %v4288_v12, 0.0 }
  0xf9   : > { %v4290_v13 = vpop.f32.mrb[4].mxu0  ;;  %3508 = vmatprep.mubr.bf16.mxu1 %v711_v9  ;;  %v5177_v46 = vmax.f32 %v4292_v14, 0.0 }
  0xfa   : > { %v4294_v15 = vpop.f32.mrb[5].mxu0  ;;  %3509 = vmatmul.mubr.bf16.vlgmr.msra.gmra.mrb[16].mxu1 %v712_v11  ;;  %v685_v21 = vmax.f32 %v4290_v13, 0.0  ;;  %v720_v9 = vpack.c.bf16 %v5179_v62, %v5176_v61 }
  0xfb   : > { %v4296_v16 = vpop.f32.mrb[6].mxu0  ;;  %v683_v19 = vmax.f32 %v4294_v15, 0.0  ;;  %v719_v54 = vpack.c.bf16 %v5177_v46, %v5178_v45 }
  0xfc   : > { %v686_v17 = vmax.f32 %v4296_v16, 0.0  ;;  %v4299_v18 = vpop.f32.mrb[7].mxu0 }
  0xfd   : > { %v684_v20 = vmax.f32 %v4299_v18, 0.0  ;;  %v4304_v22 = vpop.f32.mrb[4].mxu1 }
  0xfe   : > { %v4310_v24 = vpop.f32.mrb[5].mxu1  ;;  %v714_v25 = vpack.c.bf16 %v686_v17, %v685_v21 }
  0xff   : > { %v713_v23 = vpack.c.bf16 %v684_v20, %v683_v19  ;;  %v4316_v26 = vpop.f32.mrb[6].mxu1  ;;  %v5174_v59 = vmax.f32 %v4310_v24, 0.0 }
 0x100   : > { %v4320_v28 = vpop.f32.mrb[7].mxu1 }
 0x101   : > { %v4318_v27 = vpop.f32.mrb[8].mxu0  ;;  %3512 = vmatprep.mubr.bf16.mxu1 %v713_v23  ;;  %v5173_v60 = vmax.f32 %v4320_v28, 0.0 }
 0x102   : > { %v4322_v29 = vpop.f32.mrb[9].mxu0  ;;  %3513 = vmatmul.mubr.bf16.gmra.mrb[20].mxu1 %v714_v25  ;;  %v689_v35 = vmax.f32 %v4318_v27, 0.0  ;;  %v5166_v25 = vmax.f32 %v4304_v22, 0.0 }
 0x103   : > { %v4324_v30 = vpop.f32.mrb[10].mxu0  ;;  %v687_v33 = vmax.f32 %v4322_v29, 0.0  ;;  %v721_v63 = vpack.c.bf16 %v5173_v60, %v5174_v59 }
 0x104   : > { %v690_v31 = vmax.f32 %v4324_v30, 0.0  ;;  %v4327_v32 = vpop.f32.mrb[11].mxu0 }
 0x105   : > { %v688_v34 = vmax.f32 %v4327_v32, 0.0  ;;  %v4332_v36 = vpop.f32.mrb[8].mxu1 }
 0x106   : > { %v4338_v38 = vpop.f32.mrb[9].mxu1  ;;  %v716_v39 = vpack.c.bf16 %v690_v31, %v689_v35 }
 0x107   : > { %v715_v37 = vpack.c.bf16 %v688_v34, %v687_v33  ;;  %v4344_v40 = vpop.f32.mrb[10].mxu1  ;;  %v5165_v11 = vmax.f32 %v4338_v38, 0.0 }
 0x108   : > { %v4348_v42 = vpop.f32.mrb[11].mxu1 }
 0x109   : > { %v4346_v41 = vpop.f32.mrb[12].mxu0  ;;  %3516 = vmatprep.mubr.bf16.mxu1 %v715_v37  ;;  %v5164_v23 = vmax.f32 %v4348_v42, 0.0  ;;  %v5175_v37 = vmax.f32 %v4316_v26, 0.0 }
 0x10a   : > { %v4350_v43 = vpop.f32.mrb[13].mxu0  ;;  %3517 = vmatmul.mubr.bf16.gmra.mrb[24].mxu1 %v716_v39  ;;  %v5180_v51 = vmax.f32 %v4346_v41, 0.0 }
 0x10b   : > { %v4352_v44 = vpop.f32.mrb[14].mxu0  ;;  %v5182_v49 = vmax.f32 %v4350_v43, 0.0  ;;  %v723_v39 = vpack.c.bf16 %v5164_v23, %v5165_v11 }
 0x10c   : > { %v5183_v47 = vmax.f32 %v4352_v44, 0.0  ;;  %v4357_v48 = vpop.f32.mrb[15].mxu0 }
 0x10d   : > { %v5181_v50 = vmax.f32 %v4357_v48, 0.0  ;;  %v4362_v52 = vpop.f32.mrb[12].mxu1 }
 0x10e   : > { %v4372_v55 = vpop.f32.mrb[13].mxu1  ;;  %v718_v56 = vpack.c.bf16 %v5183_v47, %v5180_v51 }
 0x10f   : > { %v717_v53 = vpack.c.bf16 %v5181_v50, %v5182_v49  ;;  %v4378_v57 = vpop.f32.mrb[14].mxu1 }
 0x110   : > { %v4380_v58 = vpop.f32.mrb[15].mxu1 }
 0x111   : > { %3520 = vmatprep.mubr.bf16.mxu1 %v717_v53  ;;  %v722_v53 = vpack.c.bf16 %v5175_v37, %v5166_v25 }
 0x112   : > { %3521 = vmatmul.mubr.bf16.gmra.mrb[28].mxu1 %v718_v56  ;;  %v5167_v56 = vmax.f32 %v4380_v58, 0.0 }
 0x113   : > { %3524 = vmatprep.mubr.bf16.mxu1 %v719_v54  ;;  %v5169_v54 = vmax.f32 %v4372_v55, 0.0 }
 0x115   : > { %v725_v23 = vpack.c.bf16 %v5167_v56, %v5169_v54  ;;  %v3935_v56 = vld [vmem:[%s5155_s4 + $0x30] sm:$0xff]  }
 0x116   : > { %3552 = vmatprep.subr.bf16.mxu0 %v3935_v56 }
 0x117   : > { %3553 = vmatpush3.bf16.msra.mxu0 %v3935_v56  ;;  %v3939_v56 = vld [vmem:[%s5157_s6 + $0x10] sm:$0xff]  }
 0x11a   : > { %3525 = vmatmul.mubr.bf16.gmra.mrb[32].mxu1 %v720_v9  ;;  %v5172_v9 = vmax.f32 %v4344_v40, 0.0 }
 0x11b   : > { %3528 = vmatprep.mubr.bf16.mxu1 %v721_v63  ;;  %v5171_v63 = vmax.f32 %v4332_v36, 0.0 }
 0x11d   : > { %v724_v11 = vpack.c.bf16 %v5172_v9, %v5171_v63 }
 0x122   : > { %3529 = vmatmul.mubr.bf16.gmra.mrb[36].mxu1 %v722_v53  ;;  %v5170_v53 = vmax.f32 %v4378_v57, 0.0 }
 0x123   : > { %3532 = vmatprep.mubr.bf16.mxu1 %v723_v39  ;;  %v5168_v39 = vmax.f32 %v4362_v52, 0.0 }
 0x125   : > { %v726_v25 = vpack.c.bf16 %v5170_v53, %v5168_v39  ;;  %v3941_v39 = vld [vmem:[%s5157_s6 + $0x20] sm:$0xff]  }
 0x12a   : > { %3533 = vmatmul.mubr.bf16.gmra.mrb[40].mxu1 %v724_v11  ;;  %v3936_v11 = vld [vmem:[%s5155_s4 + $0x38] sm:$0xff]  }
 0x12b   : > { %3536 = vmatprep.mubr.bf16.mxu1 %v725_v23  ;;  %3554 = vmatprep.subr.bf16.mxu0 %v3936_v11  ;;  %v3937_v23 = vld [vmem:[%s5157_s6] sm:$0xff]  }
 0x12c   : > { %3555 = vmatpush3.bf16.msra.mxu0 %v3936_v11  ;;  %3588 = vmatprep.subr.bf16.mxu1 %v3937_v23  ;;  %v3940_v11 = vld [vmem:[%s5157_s6 + $0x18] sm:$0xff]  }
 0x12d   : > { %3589 = vmatpush3.bf16.msra.mxu1 %v3937_v23  ;;  %v3942_v23 = vld [vmem:[%s5157_s6 + $0x28] sm:$0xff]  }
 0x132   : > { %3537 = vmatmul.mubr.bf16.gmra.mrb[44].mxu1 %v726_v25  ;;  %v3938_v25 = vld [vmem:[%s5157_s6 + $0x8] sm:$0xff]  }
 0x133   : > { %3590 = vmatprep.subr.bf16.mxu1 %v3938_v25 }
 0x134   : > { %3591 = vmatpush3.bf16.msra.mxu1 %v3938_v25  ;;  %v3943_v25 = vld [vmem:[%s5157_s6 + $0x30] sm:$0xff]  }
 0x135   : > { %3592 = vmatprep.subr.bf16.mxu1 %v3939_v56 }
 0x138   : > { %3593 = vmatpush3.bf16.msra.mxu1 %v3939_v56  ;;  %v4454_v56 = vld [vmem:[%s5154_s3] ss:$0 sm:$0xff] }
 0x139   : > { %3594 = vmatprep.subr.bf16.mxu1 %v3940_v11 }
 0x13c   : > { %3595 = vmatpush3.bf16.msra.mxu1 %v3940_v11 }
 0x13d   : > { %3596 = vmatprep.subr.bf16.mxu1 %v3941_v39 }
 0x140   : > { %3597 = vmatpush3.bf16.msra.mxu1 %v3941_v39 }
 0x141   : > { %3598 = vmatprep.subr.bf16.mxu1 %v3942_v23 }
 0x144   : > { %3599 = vmatpush3.bf16.msra.mxu1 %v3942_v23 }
 0x145   : > { %3600 = vmatprep.subr.bf16.mxu1 %v3943_v25 }
 0x148   : > { %3601 = vmatpush3.bf16.msra.mxu1 %v3943_v25 }
 0x1cd   : > { %v3510_v11 = vpop.f32.mrb[16].mxu1 }
 0x1ce   : > { %v841_v54 = vadd.f32 %v3510_v11, %v4454_v56  ;;  %v832_v53 = vpop.f32.mrb[17].mxu1 }
 0x1cf   : > { %v833_v63 = vadd.f32 %v4454_v56, %v832_v53  ;;  %v3511_v39 = vpop.f32.mrb[18].mxu1 }
 0x1d0   : > { %v844_v9 = vadd.f32 %v3511_v39, %v4454_v56  ;;  %v835_v60 = vpop.f32.mrb[19].mxu1  ;;  %v961_v23 = vmax.f32 %v841_v54, 0.0 }
 0x1d1   : > { %v836_v59 = vadd.f32 %v4454_v56, %v835_v60  ;;  %v959_v25 = vmax.f32 %v833_v63, 0.0 }
 0x1d2   : > { %v962_v37 = vmax.f32 %v844_v9, 0.0 }
 0x1d3   : > { %v960_v61 = vmax.f32 %v836_v59, 0.0 }
 0x1d4   : > { %v992_v46 = vpack.c.bf16 %v962_v37, %v961_v23 }
 0x1d5   : > { %v991_v45 = vpack.c.bf16 %v960_v61, %v959_v25  ;;  %v3514_v62 = vpop.f32.mrb[20].mxu1 }
 0x1d6   : > { %v857_v51 = vadd.f32 %v3514_v62, %v4454_v56  ;;  %v848_v50 = vpop.f32.mrb[21].mxu1 }
 0x1d7   : > { %v849_v11 = vadd.f32 %v4454_v56, %v848_v50  ;;  %v3515_v49 = vpop.f32.mrb[22].mxu1  ;;  %3556 = vmatprep.mubr.bf16.mxu0 %v991_v45 }
 0x1d8   : > { %v860_v53 = vadd.f32 %v3515_v49, %v4454_v56  ;;  %v851_v39 = vpop.f32.mrb[23].mxu1  ;;  %3557 = vmatmul.mubr.bf16.vlgmr.msra.gmra.mrb[16].mxu0 %v992_v46  ;;  %v965_v54 = vmax.f32 %v857_v51, 0.0 }
 0x1d9   : > { %v852_v60 = vadd.f32 %v4454_v56, %v851_v39  ;;  %v963_v63 = vmax.f32 %v849_v11, 0.0 }
 0x1da   : > { %v966_v9 = vmax.f32 %v860_v53, 0.0 }
 0x1db   : > { %v964_v59 = vmax.f32 %v852_v60, 0.0 }
 0x1dc   : > { %v994_v37 = vpack.c.bf16 %v966_v9, %v965_v54 }
 0x1dd   : > { %v993_v61 = vpack.c.bf16 %v964_v59, %v963_v63  ;;  %v3518_v23 = vpop.f32.mrb[24].mxu1 }
 0x1de   : > { %v873_v62 = vadd.f32 %v3518_v23, %v4454_v56  ;;  %v864_v25 = vpop.f32.mrb[25].mxu1 }
 0x1df   : > { %v865_v50 = vadd.f32 %v4454_v56, %v864_v25  ;;  %v3519_v47 = vpop.f32.mrb[26].mxu1  ;;  %3560 = vmatprep.mubr.bf16.mxu0 %v993_v61 }
 0x1e0   : > { %v876_v45 = vadd.f32 %v3519_v47, %v4454_v56  ;;  %v867_v49 = vpop.f32.mrb[27].mxu1  ;;  %3561 = vmatmul.mubr.bf16.gmra.mrb[20].mxu0 %v994_v37  ;;  %v969_v51 = vmax.f32 %v873_v62, 0.0 }
 0x1e1   : > { %v868_v46 = vadd.f32 %v4454_v56, %v867_v49  ;;  %v967_v11 = vmax.f32 %v865_v50, 0.0 }
 0x1e2   : > { %v970_v53 = vmax.f32 %v876_v45, 0.0 }
 0x1e3   : > { %v968_v39 = vmax.f32 %v868_v46, 0.0 }
 0x1e4   : > { %v996_v60 = vpack.c.bf16 %v970_v53, %v969_v51 }
 0x1e5   : > { %v995_v54 = vpack.c.bf16 %v968_v39, %v967_v11  ;;  %v3522_v9 = vpop.f32.mrb[28].mxu1 }
 0x1e6   : > { %v889_v63 = vadd.f32 %v3522_v9, %v4454_v56  ;;  %v880_v59 = vpop.f32.mrb[29].mxu1 }
 0x1e7   : > { %v881_v23 = vadd.f32 %v4454_v56, %v880_v59  ;;  %v3523_v25 = vpop.f32.mrb[30].mxu1  ;;  %3564 = vmatprep.mubr.bf16.mxu0 %v995_v54 }
 0x1e8   : > { %v892_v47 = vadd.f32 %v3523_v25, %v4454_v56  ;;  %v883_v61 = vpop.f32.mrb[31].mxu1  ;;  %3565 = vmatmul.mubr.bf16.gmra.mrb[24].mxu0 %v996_v60  ;;  %v973_v62 = vmax.f32 %v889_v63, 0.0 }
 0x1e9   : > { %v884_v37 = vadd.f32 %v4454_v56, %v883_v61  ;;  %v971_v50 = vmax.f32 %v881_v23, 0.0 }
 0x1ea   : > { %v974_v45 = vmax.f32 %v892_v47, 0.0 }
 0x1eb   : > { %v972_v49 = vmax.f32 %v884_v37, 0.0 }
 0x1ec   : > { %v998_v46 = vpack.c.bf16 %v974_v45, %v973_v62 }
 0x1ed   : > { %v997_v51 = vpack.c.bf16 %v972_v49, %v971_v50  ;;  %v3526_v53 = vpop.f32.mrb[32].mxu1 }
 0x1ee   : > { %v905_v11 = vadd.f32 %v3526_v53, %v4454_v56  ;;  %v896_v39 = vpop.f32.mrb[33].mxu1 }
 0x1ef   : > { %v897_v9 = vadd.f32 %v4454_v56, %v896_v39  ;;  %v3527_v59 = vpop.f32.mrb[34].mxu1  ;;  %3568 = vmatprep.mubr.bf16.mxu0 %v997_v51 }
 0x1f0   : > { %v908_v54 = vadd.f32 %v3527_v59, %v4454_v56  ;;  %v899_v25 = vpop.f32.mrb[35].mxu1  ;;  %3569 = vmatmul.mubr.bf16.gmra.mrb[28].mxu0 %v998_v46  ;;  %v977_v63 = vmax.f32 %v905_v11, 0.0 }
 0x1f1   : > { %v900_v60 = vadd.f32 %v4454_v56, %v899_v25  ;;  %v975_v23 = vmax.f32 %v897_v9, 0.0 }
 0x1f2   : > { %v978_v47 = vmax.f32 %v908_v54, 0.0 }
 0x1f3   : > { %v976_v61 = vmax.f32 %v900_v60, 0.0 }
 0x1f4   : > { %v1000_v37 = vpack.c.bf16 %v978_v47, %v977_v63 }
 0x1f5   : > { %v999_v62 = vpack.c.bf16 %v976_v61, %v975_v23  ;;  %v3530_v45 = vpop.f32.mrb[36].mxu1 }
 0x1f6   : > { %v921_v50 = vadd.f32 %v3530_v45, %v4454_v56  ;;  %v912_v49 = vpop.f32.mrb[37].mxu1 }
 0x1f7   : > { %v913_v53 = vadd.f32 %v4454_v56, %v912_v49  ;;  %v3531_v39 = vpop.f32.mrb[38].mxu1  ;;  %3572 = vmatprep.mubr.bf16.mxu0 %v999_v62 }
 0x1f8   : > { %v924_v51 = vadd.f32 %v3531_v39, %v4454_v56  ;;  %v915_v59 = vpop.f32.mrb[39].mxu1  ;;  %3573 = vmatmul.mubr.bf16.gmra.mrb[32].mxu0 %v1000_v37  ;;  %v981_v11 = vmax.f32 %v921_v50, 0.0 }
 0x1f9   : > { %v916_v46 = vadd.f32 %v4454_v56, %v915_v59  ;;  %v979_v9 = vmax.f32 %v913_v53, 0.0 }
 0x1fa   : > { %v982_v54 = vmax.f32 %v924_v51, 0.0 }
 0x1fb   : > { %v980_v25 = vmax.f32 %v916_v46, 0.0 }
 0x1fc   : > { %v1002_v60 = vpack.c.bf16 %v982_v54, %v981_v11 }
 0x1fd   : > { %v1001_v63 = vpack.c.bf16 %v980_v25, %v979_v9  ;;  %v3534_v47 = vpop.f32.mrb[40].mxu1 }
 0x1fe   : > { %v937_v23 = vadd.f32 %v3534_v47, %v4454_v56  ;;  %v928_v61 = vpop.f32.mrb[41].mxu1 }
 0x1ff   : > { %v929_v45 = vadd.f32 %v4454_v56, %v928_v61  ;;  %v3535_v49 = vpop.f32.mrb[42].mxu1  ;;  %3576 = vmatprep.mubr.bf16.mxu0 %v1001_v63 }
 0x200   : > { %v940_v62 = vadd.f32 %v3535_v49, %v4454_v56  ;;  %v931_v39 = vpop.f32.mrb[43].mxu1  ;;  %3577 = vmatmul.mubr.bf16.gmra.mrb[36].mxu0 %v1002_v60  ;;  %v985_v50 = vmax.f32 %v937_v23, 0.0 }
 0x201   : > { %v932_v37 = vadd.f32 %v4454_v56, %v931_v39  ;;  %v983_v53 = vmax.f32 %v929_v45, 0.0 }
 0x202   : > { %v986_v51 = vmax.f32 %v940_v62, 0.0 }
 0x203   : > { %v984_v59 = vmax.f32 %v932_v37, 0.0 }
 0x204   : > { %v1004_v46 = vpack.c.bf16 %v986_v51, %v985_v50  ;;  %v3944_v51 = vld [vmem:[%s5157_s6 + $0x38] sm:$0xff]  }
 0x205   : > { %v1003_v11 = vpack.c.bf16 %v984_v59, %v983_v53  ;;  %v3538_v54 = vpop.f32.mrb[44].mxu1  ;;  %3602 = vmatprep.subr.bf16.mxu1 %v3944_v51  ;;  %v3945_v53 = vld [vmem:[%s5153_s2 + $0x40] sm:$0xff]   ;;  %v3947_v59 = vld [vmem:[%s5153_s2 + $0x50] sm:$0xff]  }
 0x206   : > { %v953_v9 = vadd.f32 %v3538_v54, %v4454_v56  ;;  %v944_v25 = vpop.f32.mrb[45].mxu1  ;;  %3603 = vmatpush3.bf16.msra.mxu1 %v3944_v51  ;;  %3636 = vmatprep.subr.bf16.mxu0 %v3945_v53  ;;  %v3950_v54 = vld [vmem:[%s5153_s2 + $0x68] sm:$0xff]  }
 0x207   : > { %v945_v47 = vadd.f32 %v4454_v56, %v944_v25  ;;  %v3539_v61 = vpop.f32.mrb[46].mxu1  ;;  %3580 = vmatprep.mubr.bf16.mxu0 %v1003_v11  ;;  %3637 = vmatpush3.bf16.msra.mxu0 %v3945_v53  ;;  %v3949_v11 = vld [vmem:[%s5153_s2 + $0x60] sm:$0xff]  }
 0x208   : > { %v956_v63 = vadd.f32 %v3539_v61, %v4454_v56  ;;  %v947_v49 = vpop.f32.mrb[47].mxu1  ;;  %3581 = vmatmul.mubr.bf16.gmra.mrb[40].mxu0 %v1004_v46  ;;  %v989_v23 = vmax.f32 %v953_v9, 0.0  ;;  %v3948_v46 = vld [vmem:[%s5153_s2 + $0x58] sm:$0xff]   ;;  %v3951_v9 = vld [vmem:[%s5153_s2 + $0x70] sm:$0xff]   ;;  %v4515_v25 = vld [vmem:[%s5156_s5] ss:$0 sm:$0xff] }
 0x209   : > { %v948_v60 = vadd.f32 %v4454_v56, %v947_v49  ;;  %v987_v45 = vmax.f32 %v945_v47, 0.0  ;;  %v3946_v56 = vld [vmem:[%s5153_s2 + $0x48] sm:$0xff]  }
 0x20a   : > { %v990_v62 = vmax.f32 %v956_v63, 0.0  ;;  %3638 = vmatprep.subr.bf16.mxu0 %v3946_v56 }
 0x20b   : > { %v988_v39 = vmax.f32 %v948_v60, 0.0  ;;  %3639 = vmatpush3.bf16.msra.mxu0 %v3946_v56 }
 0x20c   : > { %v1006_v37 = vpack.c.bf16 %v990_v62, %v989_v23  ;;  %3640 = vmatprep.subr.bf16.mxu0 %v3947_v59 }
 0x20d   : > { %v1005_v50 = vpack.c.bf16 %v988_v39, %v987_v45 }
 0x20f   : > { %3584 = vmatprep.mubr.bf16.mxu0 %v1005_v50  ;;  %3641 = vmatpush3.bf16.msra.mxu0 %v3947_v59 }
 0x210   : > { %3585 = vmatmul.mubr.bf16.gmra.mrb[44].mxu0 %v1006_v37  ;;  %3642 = vmatprep.subr.bf16.mxu0 %v3948_v46 }
 0x213   : > { %3643 = vmatpush3.bf16.msra.mxu0 %v3948_v46 }
 0x214   : > { %3644 = vmatprep.subr.bf16.mxu0 %v3949_v11 }
 0x217   : > { %3645 = vmatpush3.bf16.msra.mxu0 %v3949_v11 }
 0x218   : > { %3646 = vmatprep.subr.bf16.mxu0 %v3950_v54 }
 0x21b   : > { %3647 = vmatpush3.bf16.msra.mxu0 %v3950_v54 }
 0x21c   : > { %3648 = vmatprep.subr.bf16.mxu0 %v3951_v9 }
 0x21f   : > { %3649 = vmatpush3.bf16.msra.mxu0 %v3951_v9 }
 0x2ab   : > { %v3558_v47 = vpop.f32.mrb[16].mxu0 }
 0x2ac   : > { %v1121_v61 = vadd.f32 %v3558_v47, %v4515_v25  ;;  %v1112_v63 = vpop.f32.mrb[17].mxu0 }
 0x2ad   : > { %v1113_v49 = vadd.f32 %v4515_v25, %v1112_v63  ;;  %v3559_v60 = vpop.f32.mrb[18].mxu0 }
 0x2ae   : > { %v1124_v23 = vadd.f32 %v3559_v60, %v4515_v25  ;;  %v1115_v62 = vpop.f32.mrb[19].mxu0  ;;  %v1241_v39 = vmax.f32 %v1121_v61, 0.0 }
 0x2af   : > { %v1116_v45 = vadd.f32 %v4515_v25, %v1115_v62  ;;  %v1239_v50 = vmax.f32 %v1113_v49, 0.0 }
 0x2b0   : > { %v1242_v37 = vmax.f32 %v1124_v23, 0.0 }
 0x2b1   : > { %v1240_v51 = vmax.f32 %v1116_v45, 0.0 }
 0x2b2   : > { %v1272_v53 = vpack.c.bf16 %v1242_v37, %v1241_v39 }
 0x2b3   : > { %v1271_v56 = vpack.c.bf16 %v1240_v51, %v1239_v50  ;;  %v3562_v59 = vpop.f32.mrb[20].mxu0 }
 0x2b4   : > { %v1137_v46 = vadd.f32 %v3562_v59, %v4515_v25  ;;  %v1128_v11 = vpop.f32.mrb[21].mxu0 }
 0x2b5   : > { %v1129_v54 = vadd.f32 %v4515_v25, %v1128_v11  ;;  %v3563_v9 = vpop.f32.mrb[22].mxu0  ;;  %3604 = vmatprep.mubr.bf16.mxu1 %v1271_v56 }
 0x2b6   : > { %v1140_v47 = vadd.f32 %v3563_v9, %v4515_v25  ;;  %v1131_v63 = vpop.f32.mrb[23].mxu0  ;;  %3605 = vmatmul.mubr.bf16.vlgmr.msra.gmra.mrb[48].mxu1 %v1272_v53  ;;  %v1245_v61 = vmax.f32 %v1137_v46, 0.0 }
 0x2b7   : > { %v1132_v60 = vadd.f32 %v4515_v25, %v1131_v63  ;;  %v1243_v49 = vmax.f32 %v1129_v54, 0.0 }
 0x2b8   : > { %v1246_v23 = vmax.f32 %v1140_v47, 0.0 }
 0x2b9   : > { %v1244_v62 = vmax.f32 %v1132_v60, 0.0 }
 0x2ba   : > { %v1274_v45 = vpack.c.bf16 %v1246_v23, %v1245_v61 }
 0x2bb   : > { %v1273_v39 = vpack.c.bf16 %v1244_v62, %v1243_v49  ;;  %v3566_v37 = vpop.f32.mrb[24].mxu0 }
 0x2bc   : > { %v1153_v50 = vadd.f32 %v3566_v37, %v4515_v25  ;;  %v1144_v51 = vpop.f32.mrb[25].mxu0 }
 0x2bd   : > { %v1145_v59 = vadd.f32 %v4515_v25, %v1144_v51  ;;  %v3567_v11 = vpop.f32.mrb[26].mxu0  ;;  %3608 = vmatprep.mubr.bf16.mxu1 %v1273_v39 }
 0x2be   : > { %v1156_v56 = vadd.f32 %v3567_v11, %v4515_v25  ;;  %v1147_v9 = vpop.f32.mrb[27].mxu0  ;;  %3609 = vmatmul.mubr.bf16.gmra.mrb[52].mxu1 %v1274_v45  ;;  %v1249_v46 = vmax.f32 %v1153_v50, 0.0 }
 0x2bf   : > { %v1148_v53 = vadd.f32 %v4515_v25, %v1147_v9  ;;  %v1247_v54 = vmax.f32 %v1145_v59, 0.0 }
 0x2c0   : > { %v1250_v47 = vmax.f32 %v1156_v56, 0.0 }
 0x2c1   : > { %v1248_v63 = vmax.f32 %v1148_v53, 0.0 }
 0x2c2   : > { %v1276_v60 = vpack.c.bf16 %v1250_v47, %v1249_v46 }
 0x2c3   : > { %v1275_v61 = vpack.c.bf16 %v1248_v63, %v1247_v54  ;;  %v3570_v23 = vpop.f32.mrb[28].mxu0 }
 0x2c4   : > { %v1169_v49 = vadd.f32 %v3570_v23, %v4515_v25  ;;  %v1160_v62 = vpop.f32.mrb[29].mxu0 }
 0x2c5   : > { %v1161_v37 = vadd.f32 %v4515_v25, %v1160_v62  ;;  %v3571_v51 = vpop.f32.mrb[30].mxu0  ;;  %3612 = vmatprep.mubr.bf16.mxu1 %v1275_v61 }
 0x2c6   : > { %v1172_v39 = vadd.f32 %v3571_v51, %v4515_v25  ;;  %v1163_v11 = vpop.f32.mrb[31].mxu0  ;;  %3613 = vmatmul.mubr.bf16.gmra.mrb[56].mxu1 %v1276_v60  ;;  %v1253_v50 = vmax.f32 %v1169_v49, 0.0 }
 0x2c7   : > { %v1164_v45 = vadd.f32 %v4515_v25, %v1163_v11  ;;  %v1251_v59 = vmax.f32 %v1161_v37, 0.0 }
 0x2c8   : > { %v1254_v56 = vmax.f32 %v1172_v39, 0.0 }
 0x2c9   : > { %v1252_v9 = vmax.f32 %v1164_v45, 0.0 }
 0x2ca   : > { %v1278_v53 = vpack.c.bf16 %v1254_v56, %v1253_v50 }
 0x2cb   : > { %v1277_v46 = vpack.c.bf16 %v1252_v9, %v1251_v59  ;;  %v3574_v47 = vpop.f32.mrb[32].mxu0 }
 0x2cc   : > { %v1185_v54 = vadd.f32 %v3574_v47, %v4515_v25  ;;  %v1176_v63 = vpop.f32.mrb[33].mxu0 }
 0x2cd   : > { %v1177_v23 = vadd.f32 %v4515_v25, %v1176_v63  ;;  %v3575_v62 = vpop.f32.mrb[34].mxu0  ;;  %3616 = vmatprep.mubr.bf16.mxu1 %v1277_v46 }
 0x2ce   : > { %v1188_v61 = vadd.f32 %v3575_v62, %v4515_v25  ;;  %v1179_v51 = vpop.f32.mrb[35].mxu0  ;;  %3617 = vmatmul.mubr.bf16.gmra.mrb[60].mxu1 %v1278_v53  ;;  %v1257_v49 = vmax.f32 %v1185_v54, 0.0 }
 0x2cf   : > { %v1180_v60 = vadd.f32 %v4515_v25, %v1179_v51  ;;  %v1255_v37 = vmax.f32 %v1177_v23, 0.0 }
 0x2d0   : > { %v1258_v39 = vmax.f32 %v1188_v61, 0.0 }
 0x2d1   : > { %v1256_v11 = vmax.f32 %v1180_v60, 0.0 }
 0x2d2   : > { %v1280_v45 = vpack.c.bf16 %v1258_v39, %v1257_v49 }
 0x2d3   : > { %v1279_v50 = vpack.c.bf16 %v1256_v11, %v1255_v37  ;;  %v3578_v56 = vpop.f32.mrb[36].mxu0 }
 0x2d4   : > { %v1201_v59 = vadd.f32 %v3578_v56, %v4515_v25  ;;  %v1192_v9 = vpop.f32.mrb[37].mxu0 }
 0x2d5   : > { %v1193_v47 = vadd.f32 %v4515_v25, %v1192_v9  ;;  %v3579_v63 = vpop.f32.mrb[38].mxu0  ;;  %3620 = vmatprep.mubr.bf16.mxu1 %v1279_v50 }
 0x2d6   : > { %v1204_v46 = vadd.f32 %v3579_v63, %v4515_v25  ;;  %v1195_v62 = vpop.f32.mrb[39].mxu0  ;;  %3621 = vmatmul.mubr.bf16.gmra.mrb[64].mxu1 %v1280_v45  ;;  %v1261_v54 = vmax.f32 %v1201_v59, 0.0 }
 0x2d7   : > { %v1196_v53 = vadd.f32 %v4515_v25, %v1195_v62  ;;  %v1259_v23 = vmax.f32 %v1193_v47, 0.0 }
 0x2d8   : > { %v1262_v61 = vmax.f32 %v1204_v46, 0.0 }
 0x2d9   : > { %v1260_v51 = vmax.f32 %v1196_v53, 0.0 }
 0x2da   : > { %v1282_v60 = vpack.c.bf16 %v1262_v61, %v1261_v54 }
 0x2db   : > { %v1281_v49 = vpack.c.bf16 %v1260_v51, %v1259_v23  ;;  %v3582_v39 = vpop.f32.mrb[40].mxu0 }
 0x2dc   : > { %v1217_v37 = vadd.f32 %v3582_v39, %v4515_v25  ;;  %v1208_v11 = vpop.f32.mrb[41].mxu0 }
 0x2dd   : > { %v1209_v56 = vadd.f32 %v4515_v25, %v1208_v11  ;;  %v3583_v9 = vpop.f32.mrb[42].mxu0  ;;  %3624 = vmatprep.mubr.bf16.mxu1 %v1281_v49 }
 0x2de   : > { %v1220_v50 = vadd.f32 %v3583_v9, %v4515_v25  ;;  %v1211_v63 = vpop.f32.mrb[43].mxu0  ;;  %3625 = vmatmul.mubr.bf16.gmra.mrb[68].mxu1 %v1282_v60  ;;  %v1265_v59 = vmax.f32 %v1217_v37, 0.0 }
 0x2df   : > { %v1212_v45 = vadd.f32 %v4515_v25, %v1211_v63  ;;  %v1263_v47 = vmax.f32 %v1209_v56, 0.0 }
 0x2e0   : > { %v1266_v46 = vmax.f32 %v1220_v50, 0.0 }
 0x2e1   : > { %v1264_v62 = vmax.f32 %v1212_v45, 0.0 }
 0x2e2   : > { %v1284_v53 = vpack.c.bf16 %v1266_v46, %v1265_v59  ;;  %v3952_v46 = vld [vmem:[%s5153_s2 + $0x78] sm:$0xff]  }
 0x2e3   : > { %v1283_v54 = vpack.c.bf16 %v1264_v62, %v1263_v47  ;;  %v3586_v61 = vpop.f32.mrb[44].mxu0  ;;  %3650 = vmatprep.subr.bf16.mxu0 %v3952_v46  ;;  %v3953_v47 = vld [vmem:[%s5155_s4 + $0x40] sm:$0xff]   ;;  %v3955_v62 = vld [vmem:[%s5155_s4 + $0x50] sm:$0xff]  }
 0x2e4   : > { %v1233_v23 = vadd.f32 %v3586_v61, %v4515_v25  ;;  %v1224_v51 = vpop.f32.mrb[45].mxu0  ;;  %3651 = vmatpush3.bf16.msra.mxu0 %v3952_v46  ;;  %3684 = vmatprep.subr.bf16.mxu1 %v3953_v47  ;;  %v3958_v61 = vld [vmem:[%s5155_s4 + $0x68] sm:$0xff]  }
 0x2e5   : > { %v1225_v39 = vadd.f32 %v4515_v25, %v1224_v51  ;;  %v3587_v11 = vpop.f32.mrb[46].mxu0  ;;  %3628 = vmatprep.mubr.bf16.mxu1 %v1283_v54  ;;  %3685 = vmatpush3.bf16.msra.mxu1 %v3953_v47  ;;  %v3957_v54 = vld [vmem:[%s5155_s4 + $0x60] sm:$0xff]  }
 0x2e6   : > { %v1236_v49 = vadd.f32 %v3587_v11, %v4515_v25  ;;  %v1227_v9 = vpop.f32.mrb[47].mxu0  ;;  %3629 = vmatmul.mubr.bf16.gmra.mrb[72].mxu1 %v1284_v53  ;;  %v1269_v37 = vmax.f32 %v1233_v23, 0.0  ;;  %v3956_v53 = vld [vmem:[%s5155_s4 + $0x58] sm:$0xff]   ;;  %v3959_v23 = vld [vmem:[%s5155_s4 + $0x70] sm:$0xff]   ;;  %v4576_v51 = vld [vmem:[%s5158_s7] ss:$0 sm:$0xff] }
 0x2e7   : > { %v1228_v60 = vadd.f32 %v4515_v25, %v1227_v9  ;;  %v1267_v56 = vmax.f32 %v1225_v39, 0.0  ;;  %v3954_v25 = vld [vmem:[%s5155_s4 + $0x48] sm:$0xff]  }
 0x2e8   : > { %v1270_v50 = vmax.f32 %v1236_v49, 0.0  ;;  %3686 = vmatprep.subr.bf16.mxu1 %v3954_v25 }
 0x2e9   : > { %v1268_v63 = vmax.f32 %v1228_v60, 0.0  ;;  %3687 = vmatpush3.bf16.msra.mxu1 %v3954_v25 }
 0x2ea   : > { %v1286_v45 = vpack.c.bf16 %v1270_v50, %v1269_v37  ;;  %3688 = vmatprep.subr.bf16.mxu1 %v3955_v62 }
 0x2eb   : > { %v1285_v59 = vpack.c.bf16 %v1268_v63, %v1267_v56 }
 0x2ed   : > { %3632 = vmatprep.mubr.bf16.mxu1 %v1285_v59  ;;  %3689 = vmatpush3.bf16.msra.mxu1 %v3955_v62 }
 0x2ee   : > { %3633 = vmatmul.mubr.bf16.gmra.mrb[76].mxu1 %v1286_v45  ;;  %3690 = vmatprep.subr.bf16.mxu1 %v3956_v53 }
 0x2f1   : > { %3691 = vmatpush3.bf16.msra.mxu1 %v3956_v53 }
 0x2f2   : > { %3692 = vmatprep.subr.bf16.mxu1 %v3957_v54 }
 0x2f5   : > { %3693 = vmatpush3.bf16.msra.mxu1 %v3957_v54 }
 0x2f6   : > { %3694 = vmatprep.subr.bf16.mxu1 %v3958_v61 }
 0x2f9   : > { %3695 = vmatpush3.bf16.msra.mxu1 %v3958_v61 }
 0x2fa   : > { %3696 = vmatprep.subr.bf16.mxu1 %v3959_v23 }
 0x2fd   : > { %3697 = vmatpush3.bf16.msra.mxu1 %v3959_v23 }
 0x389   : > { %v3606_v39 = vpop.f32.mrb[48].mxu1 }
 0x38a   : > { %v1401_v11 = vadd.f32 %v3606_v39, %v4576_v51  ;;  %v1392_v49 = vpop.f32.mrb[49].mxu1 }
 0x38b   : > { %v1393_v9 = vadd.f32 %v4576_v51, %v1392_v49  ;;  %v3607_v60 = vpop.f32.mrb[50].mxu1 }
 0x38c   : > { %v1404_v37 = vadd.f32 %v3607_v60, %v4576_v51  ;;  %v1395_v50 = vpop.f32.mrb[51].mxu1  ;;  %v1521_v45 = vmax.f32 %v1401_v11, 0.0 }
 0x38d   : > { %v1519_v56 = vmax.f32 %v1393_v9, 0.0  ;;  %v1396_v63 = vadd.f32 %v4576_v51, %v1395_v50 }
 0x38e   : > { %v1522_v59 = vmax.f32 %v1404_v37, 0.0  ;;  %v4596_v54 = vadd.f32 %v1521_v45, %v681_v7 }
 0x38f   : > { %v1520_v46 = vmax.f32 %v1396_v63, 0.0  ;;  %v4588_v25 = vadd.f32 %v1519_v56, %v679_v5 }
 0x390   : > { %v4584_v47 = vadd.f32 %v1522_v59, %v682_v3 }
 0x391   : > { %v4592_v62 = vadd.f32 %v1520_v46, %v680_v6  ;;  %v3610_v53 = vpop.f32.mrb[52].mxu1 }
 0x392   : > { %v1417_v61 = vadd.f32 %v3610_v53, %v4576_v51  ;;  %v1408_v23 = vpop.f32.mrb[53].mxu1  ;;  %v1584_v5 = vpack.c.bf16 %v4584_v47, %v4596_v54 }
 0x393   : > { %v1409_v2 = vadd.f32 %v4576_v51, %v1408_v23  ;;  %v3611_v3 = vpop.f32.mrb[54].mxu1  ;;  %v1583_v1 = vpack.c.bf16 %v4592_v62, %v4588_v25 }
 0x394   : > { %v1420_v4 = vadd.f32 %v3611_v3, %v4576_v51  ;;  %v1411_v6 = vpop.f32.mrb[55].mxu1  ;;  %v1525_v7 = vmax.f32 %v1417_v61, 0.0 }
 0x395   : > { %v1523_v39 = vmax.f32 %v1409_v2, 0.0  ;;  %v1412_v0 = vadd.f32 %v4576_v51, %v1411_v6  ;;  %3652 = vmatprep.mubr.bf16.mxu0 %v1583_v1 }
 0x396   : > { %v1526_v11 = vmax.f32 %v1420_v4, 0.0  ;;  %3653 = vmatmul.mubr.bf16.vlgmr.msra.gmra.mrb[48].mxu0 %v1584_v5  ;;  %v4620_v56 = vadd.f32 %v1525_v7, %v685_v21  ;;  %v5188_v7 = vmax.f32 %v4352_v44, 0.0 }
 0x397   : > { %v1524_v49 = vmax.f32 %v1412_v0, 0.0  ;;  %v4612_v60 = vadd.f32 %v1523_v39, %v683_v19 }
 0x398   : > { %v4608_v9 = vadd.f32 %v1526_v11, %v686_v17 }
 0x399   : > { %v4616_v37 = vadd.f32 %v1524_v49, %v684_v20  ;;  %v3614_v50 = vpop.f32.mrb[56].mxu1  ;;  %v5189_v49 = vmax.f32 %v4350_v43, 0.0 }
 0x39a   : > { %v1433_v63 = vadd.f32 %v3614_v50, %v4576_v51  ;;  %v1424_v45 = vpop.f32.mrb[57].mxu1  ;;  %v1586_v18 = vpack.c.bf16 %v4608_v9, %v4620_v56 }
 0x39b   : > { %v1425_v16 = vadd.f32 %v4576_v51, %v1424_v45  ;;  %v3615_v17 = vpop.f32.mrb[58].mxu1  ;;  %v1585_v15 = vpack.c.bf16 %v4616_v37, %v4612_v60 }
 0x39c   : > { %v1436_v19 = vadd.f32 %v3615_v17, %v4576_v51  ;;  %v1427_v59 = vpop.f32.mrb[59].mxu1  ;;  %v1529_v21 = vmax.f32 %v1433_v63, 0.0  ;;  %v5190_v63 = vmax.f32 %v4357_v48, 0.0  ;;  %v5191_v17 = vmax.f32 %v4346_v41, 0.0 }
 0x39d   : > { %v1527_v20 = vmax.f32 %v1425_v16, 0.0  ;;  %v1428_v13 = vadd.f32 %v4576_v51, %v1427_v59  ;;  %3656 = vmatprep.mubr.bf16.mxu0 %v1585_v15 }
 0x39e   : > { %v1530_v46 = vmax.f32 %v1436_v19, 0.0  ;;  %3657 = vmatmul.mubr.bf16.gmra.mrb[52].mxu0 %v1586_v18  ;;  %v4644_v1 = vadd.f32 %v1529_v21, %v689_v35 }
 0x39f   : > { %v1528_v53 = vmax.f32 %v1428_v13, 0.0  ;;  %v4636_v23 = vadd.f32 %v1527_v20, %v687_v33 }
 0x3a0   : > { %v4632_v61 = vadd.f32 %v1530_v46, %v690_v31 }
 0x3a1   : > { %v4640_v2 = vadd.f32 %v1528_v53, %v688_v34  ;;  %v3618_v3 = vpop.f32.mrb[60].mxu1 }
 0x3a2   : > { %v1449_v5 = vadd.f32 %v3618_v3, %v4576_v51  ;;  %v1440_v4 = vpop.f32.mrb[61].mxu1  ;;  %v1588_v32 = vpack.c.bf16 %v4632_v61, %v4644_v1 }
 0x3a3   : > { %v1441_v30 = vadd.f32 %v4576_v51, %v1440_v4  ;;  %v3619_v31 = vpop.f32.mrb[62].mxu1  ;;  %v1587_v29 = vpack.c.bf16 %v4640_v2, %v4636_v23 }
 0x3a4   : > { %v1452_v33 = vadd.f32 %v3619_v31, %v4576_v51  ;;  %v1443_v6 = vpop.f32.mrb[63].mxu1  ;;  %v1533_v35 = vmax.f32 %v1449_v5, 0.0  ;;  %v5192_v5 = vmax.f32 %v4288_v12, 0.0 }
 0x3a5   : > { %v1531_v34 = vmax.f32 %v1441_v30, 0.0  ;;  %v1444_v27 = vadd.f32 %v4576_v51, %v1443_v6  ;;  %3660 = vmatprep.mubr.bf16.mxu0 %v1587_v29  ;;  %v5193_v30 = vmax.f32 %v4282_v10, 0.0  ;;  %v5194_v29 = vmax.f32 %v4292_v14, 0.0 }
 0x3a6   : > { %v1534_v39 = vmax.f32 %v1452_v33, 0.0  ;;  %3661 = vmatmul.mubr.bf16.gmra.mrb[56].mxu0 %v1588_v32  ;;  %v4668_v15 = vadd.f32 %v1533_v35, %v5191_v17  ;;  %v5195_v32 = vmax.f32 %v4276_v8, 0.0 }
 0x3a7   : > { %v1532_v0 = vmax.f32 %v1444_v27, 0.0  ;;  %v4660_v50 = vadd.f32 %v1531_v34, %v5189_v49 }
 0x3a8   : > { %v4656_v11 = vadd.f32 %v1534_v39, %v5188_v7 }
 0x3a9   : > { %v4664_v45 = vadd.f32 %v1532_v0, %v5190_v63  ;;  %v3622_v16 = vpop.f32.mrb[64].mxu1 }
 0x3aa   : > { %v1465_v19 = vadd.f32 %v3622_v16, %v4576_v51  ;;  %v1456_v59 = vpop.f32.mrb[65].mxu1  ;;  %v1590_v48 = vpack.c.bf16 %v4656_v11, %v4668_v15 }
 0x3ab   : > { %v1457_v44 = vadd.f32 %v4576_v51, %v1456_v59  ;;  %v3623_v18 = vpop.f32.mrb[66].mxu1  ;;  %v1589_v43 = vpack.c.bf16 %v4664_v45, %v4660_v50 }
 0x3ac   : > { %v1468_v20 = vadd.f32 %v3623_v18, %v4576_v51  ;;  %v1459_v13 = vpop.f32.mrb[67].mxu1  ;;  %v1537_v46 = vmax.f32 %v1465_v19, 0.0  ;;  %v5196_v19 = vmax.f32 %v4316_v26, 0.0 }
 0x3ad   : > { %v1535_v21 = vmax.f32 %v1457_v44, 0.0  ;;  %v1460_v41 = vadd.f32 %v4576_v51, %v1459_v13  ;;  %3664 = vmatprep.mubr.bf16.mxu0 %v1589_v43  ;;  %v5197_v44 = vmax.f32 %v4310_v24, 0.0  ;;  %v5198_v43 = vmax.f32 %v4320_v28, 0.0 }
 0x3ae   : > { %v1538_v53 = vmax.f32 %v1468_v20, 0.0  ;;  %3665 = vmatmul.mubr.bf16.gmra.mrb[60].mxu0 %v1590_v48  ;;  %v4692_v34 = vadd.f32 %v1537_v46, %v5195_v32  ;;  %v5199_v48 = vmax.f32 %v4304_v22, 0.0 }
 0x3af   : > { %v1536_v3 = vmax.f32 %v1460_v41, 0.0  ;;  %v4684_v31 = vadd.f32 %v1535_v21, %v5193_v30 }
 0x3b0   : > { %v4680_v4 = vadd.f32 %v1538_v53, %v5192_v5 }
 0x3b1   : > { %v4688_v33 = vadd.f32 %v1536_v3, %v5194_v29  ;;  %v3626_v6 = vpop.f32.mrb[68].mxu1 }
 0x3b2   : > { %v1481_v27 = vadd.f32 %v3626_v6, %v4576_v51  ;;  %v1472_v35 = vpop.f32.mrb[69].mxu1  ;;  %v1592_v14 = vpack.c.bf16 %v4680_v4, %v4692_v34 }
 0x3b3   : > { %v1473_v12 = vadd.f32 %v4576_v51, %v1472_v35  ;;  %v3627_v39 = vpop.f32.mrb[70].mxu1  ;;  %v1591_v10 = vpack.c.bf16 %v4688_v33, %v4684_v31 }
 0x3b4   : > { %v1484_v0 = vadd.f32 %v3627_v39, %v4576_v51  ;;  %v1475_v7 = vpop.f32.mrb[71].mxu1  ;;  %v1541_v63 = vmax.f32 %v1481_v27, 0.0  ;;  %v5200_v27 = vmax.f32 %v4344_v40, 0.0 }
 0x3b5   : > { %v1539_v49 = vmax.f32 %v1473_v12, 0.0  ;;  %v1476_v8 = vadd.f32 %v4576_v51, %v1475_v7  ;;  %3668 = vmatprep.mubr.bf16.mxu0 %v1591_v10  ;;  %v5201_v12 = vmax.f32 %v4338_v38, 0.0  ;;  %v5202_v10 = vmax.f32 %v4348_v42, 0.0 }
 0x3b6   : > { %v1542_v16 = vmax.f32 %v1484_v0, 0.0  ;;  %3669 = vmatmul.mubr.bf16.gmra.mrb[64].mxu0 %v1592_v14  ;;  %v4716_v21 = vadd.f32 %v1541_v63, %v5199_v48  ;;  %v5203_v14 = vmax.f32 %v4332_v36, 0.0 }
 0x3b7   : > { %v1540_v17 = vmax.f32 %v1476_v8, 0.0  ;;  %v4708_v18 = vadd.f32 %v1539_v49, %v5197_v44 }
 0x3b8   : > { %v4704_v59 = vadd.f32 %v1542_v16, %v5196_v19 }
 0x3b9   : > { %v4712_v20 = vadd.f32 %v1540_v17, %v5198_v43  ;;  %v3630_v13 = vpop.f32.mrb[72].mxu1 }
 0x3ba   : > { %v1497_v41 = vadd.f32 %v3630_v13, %v4576_v51  ;;  %v1488_v46 = vpop.f32.mrb[73].mxu1  ;;  %v1594_v28 = vpack.c.bf16 %v4704_v59, %v4716_v21 }
 0x3bb   : > { %v1489_v26 = vadd.f32 %v4576_v51, %v1488_v46  ;;  %v3631_v53 = vpop.f32.mrb[74].mxu1  ;;  %v1593_v24 = vpack.c.bf16 %v4712_v20, %v4708_v18 }
 0x3bc   : > { %v1500_v3 = vadd.f32 %v3631_v53, %v4576_v51  ;;  %v1491_v5 = vpop.f32.mrb[75].mxu1  ;;  %v1545_v29 = vmax.f32 %v1497_v41, 0.0  ;;  %v5204_v41 = vmax.f32 %v4378_v57, 0.0 }
 0x3bd   : > { %v1543_v30 = vmax.f32 %v1489_v26, 0.0  ;;  %v1492_v22 = vadd.f32 %v4576_v51, %v1491_v5  ;;  %3672 = vmatprep.mubr.bf16.mxu0 %v1593_v24  ;;  %v5205_v26 = vmax.f32 %v4372_v55, 0.0  ;;  %v5206_v24 = vmax.f32 %v4380_v58, 0.0  ;;  %v3960_v55 = vld [vmem:[%s5155_s4 + $0x78] sm:$0xff]   ;;  %v3962_v58 = vld [vmem:[%s5157_s6 + $0x48] sm:$0xff]  }
 0x3be   : > { %v1546_v6 = vmax.f32 %v1500_v3, 0.0  ;;  %3673 = vmatmul.mubr.bf16.gmra.mrb[68].mxu0 %v1594_v28  ;;  %v4740_v49 = vadd.f32 %v1545_v29, %v5203_v14  ;;  %v5207_v5 = vmax.f32 %v4362_v52, 0.0  ;;  %3698 = vmatprep.subr.bf16.mxu1 %v3960_v55  ;;  %v3961_v52 = vld [vmem:[%s5157_s6 + $0x40] sm:$0xff]  }
 0x3bf   : > { %v1544_v32 = vmax.f32 %v1492_v22, 0.0  ;;  %v4732_v39 = vadd.f32 %v1543_v30, %v5201_v12  ;;  %3699 = vmatpush3.bf16.msra.mxu1 %v3960_v55  ;;  %3732 = vmatprep.subr.bf16.mxu0 %v3961_v52  ;;  %v3963_v30 = vld [vmem:[%s5157_s6 + $0x50] sm:$0xff]   ;;  %v3964_v22 = vld [vmem:[%s5157_s6 + $0x58] sm:$0xff]   ;;  %v3965_v29 = vld [vmem:[%s5157_s6 + $0x60] sm:$0xff]  }
 0x3c0   : > { %v4728_v35 = vadd.f32 %v1546_v6, %v5200_v27  ;;  %3733 = vmatpush3.bf16.msra.mxu0 %v3961_v52  ;;  %v3966_v6 = vld [vmem:[%s5157_s6 + $0x68] sm:$0xff]   ;;  %v4797_v27 = vld [vmem:[%s5154_s3 + $0x1] ss:$0 sm:$0xff] }
 0x3c1   : > { %v4736_v0 = vadd.f32 %v1544_v32, %v5202_v10  ;;  %v3634_v7 = vpop.f32.mrb[76].mxu1  ;;  %3734 = vmatprep.subr.bf16.mxu0 %v3962_v58  ;;  %v3967_v32 = vld [vmem:[%s5157_s6 + $0x70] sm:$0xff]  }
 0x3c2   : > { %v1513_v8 = vadd.f32 %v3634_v7, %v4576_v51  ;;  %v1504_v63 = vpop.f32.mrb[77].mxu1  ;;  %v1596_v42 = vpack.c.bf16 %v4728_v35, %v4740_v49 }
 0x3c3   : > { %v1505_v40 = vadd.f32 %v4576_v51, %v1504_v63  ;;  %v3635_v16 = vpop.f32.mrb[78].mxu1  ;;  %v1595_v38 = vpack.c.bf16 %v4736_v0, %v4732_v39 }
 0x3c4   : > { %v1516_v17 = vadd.f32 %v3635_v16, %v4576_v51  ;;  %v1507_v19 = vpop.f32.mrb[79].mxu1  ;;  %v1549_v43 = vmax.f32 %v1513_v8, 0.0  ;;  %3735 = vmatpush3.bf16.msra.mxu0 %v3962_v58 }
 0x3c5   : > { %v1547_v44 = vmax.f32 %v1505_v40, 0.0  ;;  %v1508_v36 = vadd.f32 %v4576_v51, %v1507_v19  ;;  %3676 = vmatprep.mubr.bf16.mxu0 %v1595_v38  ;;  %3736 = vmatprep.subr.bf16.mxu0 %v3963_v30 }
 0x3c6   : > { %v1550_v13 = vmax.f32 %v1516_v17, 0.0  ;;  %3677 = vmatmul.mubr.bf16.gmra.mrb[72].mxu0 %v1596_v42  ;;  %v4764_v51 = vadd.f32 %v1549_v43, %v5207_v5 }
 0x3c7   : > { %v1548_v48 = vmax.f32 %v1508_v36, 0.0  ;;  %v4756_v53 = vadd.f32 %v1547_v44, %v5205_v26 }
 0x3c8   : > { %v4752_v46 = vadd.f32 %v1550_v13, %v5204_v41  ;;  %3737 = vmatpush3.bf16.msra.mxu0 %v3963_v30 }
 0x3c9   : > { %v4760_v3 = vadd.f32 %v1548_v48, %v5206_v24  ;;  %3738 = vmatprep.subr.bf16.mxu0 %v3964_v22 }
 0x3ca   : > { %v1598_v57 = vpack.c.bf16 %v4752_v46, %v4764_v51 }
 0x3cb   : > { %v1597_v28 = vpack.c.bf16 %v4760_v3, %v4756_v53 }
 0x3cc   : > { %3739 = vmatpush3.bf16.msra.mxu0 %v3964_v22 }
 0x3cd   : > { %3680 = vmatprep.mubr.bf16.mxu0 %v1597_v28  ;;  %3740 = vmatprep.subr.bf16.mxu0 %v3965_v29 }
 0x3ce   : > { %3681 = vmatmul.mubr.bf16.gmra.mrb[76].mxu0 %v1598_v57 }
 0x3d0   : > { %3741 = vmatpush3.bf16.msra.mxu0 %v3965_v29 }
 0x3d1   : > { %3742 = vmatprep.subr.bf16.mxu0 %v3966_v6 }
 0x3d4   : > { %3743 = vmatpush3.bf16.msra.mxu0 %v3966_v6 }
 0x3d5   : > { %3744 = vmatprep.subr.bf16.mxu0 %v3967_v32 }
 0x3d8   : > { %3745 = vmatpush3.bf16.msra.mxu0 %v3967_v32 }
 0x469   : > { %v3654_v12 = vpop.f32.mrb[48].mxu0 }
 0x46a   : > { %v1715_v10 = vadd.f32 %v3654_v12, %v4797_v27  ;;  %v1706_v7 = vpop.f32.mrb[49].mxu0 }
 0x46b   : > { %v1707_v14 = vadd.f32 %v4797_v27, %v1706_v7  ;;  %v3655_v8 = vpop.f32.mrb[50].mxu0 }
 0x46c   : > { %v1718_v63 = vadd.f32 %v3655_v8, %v4797_v27  ;;  %v1709_v40 = vpop.f32.mrb[51].mxu0  ;;  %v1835_v38 = vmax.f32 %v1715_v10, 0.0 }
 0x46d   : > { %v1710_v16 = vadd.f32 %v4797_v27, %v1709_v40  ;;  %v1833_v19 = vmax.f32 %v1707_v14, 0.0 }
 0x46e   : > { %v1836_v17 = vmax.f32 %v1718_v63, 0.0 }
 0x46f   : > { %v1834_v42 = vmax.f32 %v1710_v16, 0.0 }
 0x470   : > { %v1866_v44 = vpack.c.bf16 %v1836_v17, %v1835_v38 }
 0x471   : > { %v1865_v36 = vpack.c.bf16 %v1834_v42, %v1833_v19  ;;  %v3658_v43 = vpop.f32.mrb[52].mxu0 }
 0x472   : > { %v1731_v13 = vadd.f32 %v3658_v43, %v4797_v27  ;;  %v1722_v48 = vpop.f32.mrb[53].mxu0 }
 0x473   : > { %v1723_v41 = vadd.f32 %v4797_v27, %v1722_v48  ;;  %v3659_v26 = vpop.f32.mrb[54].mxu0  ;;  %3700 = vmatprep.mubr.bf16.mxu1 %v1865_v36 }
 0x474   : > { %v1734_v24 = vadd.f32 %v3659_v26, %v4797_v27  ;;  %v1725_v5 = vpop.f32.mrb[55].mxu0  ;;  %3701 = vmatmul.mubr.bf16.vlgmr.msra.gmra.mrb[80].mxu1 %v1866_v44  ;;  %v1839_v57 = vmax.f32 %v1731_v13, 0.0 }
 0x475   : > { %v1726_v28 = vadd.f32 %v4797_v27, %v1725_v5  ;;  %v1837_v52 = vmax.f32 %v1723_v41, 0.0 }
 0x476   : > { %v1840_v55 = vmax.f32 %v1734_v24, 0.0 }
 0x477   : > { %v1838_v58 = vmax.f32 %v1726_v28, 0.0 }
 0x478   : > { %v1868_v30 = vpack.c.bf16 %v1840_v55, %v1839_v57 }
 0x479   : > { %v1867_v22 = vpack.c.bf16 %v1838_v58, %v1837_v52  ;;  %v3662_v29 = vpop.f32.mrb[56].mxu0 }
 0x47a   : > { %v1747_v6 = vadd.f32 %v3662_v29, %v4797_v27  ;;  %v1738_v32 = vpop.f32.mrb[57].mxu0 }
 0x47b   : > { %v1739_v12 = vadd.f32 %v4797_v27, %v1738_v32  ;;  %v3663_v10 = vpop.f32.mrb[58].mxu0  ;;  %3704 = vmatprep.mubr.bf16.mxu1 %v1867_v22 }
 0x47c   : > { %v1750_v7 = vadd.f32 %v3663_v10, %v4797_v27  ;;  %v1741_v14 = vpop.f32.mrb[59].mxu0  ;;  %3705 = vmatmul.mubr.bf16.gmra.mrb[84].mxu1 %v1868_v30  ;;  %v1843_v63 = vmax.f32 %v1747_v6, 0.0 }
 0x47d   : > { %v1742_v8 = vadd.f32 %v4797_v27, %v1741_v14  ;;  %v1841_v16 = vmax.f32 %v1739_v12, 0.0 }
 0x47e   : > { %v1844_v40 = vmax.f32 %v1750_v7, 0.0 }
 0x47f   : > { %v1842_v38 = vmax.f32 %v1742_v8, 0.0 }
 0x480   : > { %v1870_v17 = vpack.c.bf16 %v1844_v40, %v1843_v63 }
 0x481   : > { %v1869_v19 = vpack.c.bf16 %v1842_v38, %v1841_v16  ;;  %v3666_v42 = vpop.f32.mrb[60].mxu0 }
 0x482   : > { %v1763_v44 = vadd.f32 %v3666_v42, %v4797_v27  ;;  %v1754_v36 = vpop.f32.mrb[61].mxu0 }
 0x483   : > { %v1755_v43 = vadd.f32 %v4797_v27, %v1754_v36  ;;  %v3667_v13 = vpop.f32.mrb[62].mxu0  ;;  %3708 = vmatprep.mubr.bf16.mxu1 %v1869_v19 }
 0x484   : > { %v1766_v48 = vadd.f32 %v3667_v13, %v4797_v27  ;;  %v1757_v41 = vpop.f32.mrb[63].mxu0  ;;  %3709 = vmatmul.mubr.bf16.gmra.mrb[88].mxu1 %v1870_v17  ;;  %v1847_v24 = vmax.f32 %v1763_v44, 0.0 }
 0x485   : > { %v1758_v26 = vadd.f32 %v4797_v27, %v1757_v41  ;;  %v1845_v28 = vmax.f32 %v1755_v43, 0.0 }
 0x486   : > { %v1848_v5 = vmax.f32 %v1766_v48, 0.0 }
 0x487   : > { %v1846_v57 = vmax.f32 %v1758_v26, 0.0 }
 0x488   : > { %v1872_v55 = vpack.c.bf16 %v1848_v5, %v1847_v24 }
 0x489   : > { %v1871_v52 = vpack.c.bf16 %v1846_v57, %v1845_v28  ;;  %v3670_v58 = vpop.f32.mrb[64].mxu0 }
 0x48a   : > { %v1779_v30 = vadd.f32 %v3670_v58, %v4797_v27  ;;  %v1770_v22 = vpop.f32.mrb[65].mxu0 }
 0x48b   : > { %v1771_v29 = vadd.f32 %v4797_v27, %v1770_v22  ;;  %v3671_v6 = vpop.f32.mrb[66].mxu0  ;;  %3712 = vmatprep.mubr.bf16.mxu1 %v1871_v52 }
 0x48c   : > { %v1782_v32 = vadd.f32 %v3671_v6, %v4797_v27  ;;  %v1773_v12 = vpop.f32.mrb[67].mxu0  ;;  %3713 = vmatmul.mubr.bf16.gmra.mrb[92].mxu1 %v1872_v55  ;;  %v1851_v7 = vmax.f32 %v1779_v30, 0.0 }
 0x48d   : > { %v1774_v10 = vadd.f32 %v4797_v27, %v1773_v12  ;;  %v1849_v8 = vmax.f32 %v1771_v29, 0.0 }
 0x48e   : > { %v1852_v14 = vmax.f32 %v1782_v32, 0.0 }
 0x48f   : > { %v1850_v63 = vmax.f32 %v1774_v10, 0.0 }
 0x490   : > { %v1874_v40 = vpack.c.bf16 %v1852_v14, %v1851_v7 }
 0x491   : > { %v1873_v16 = vpack.c.bf16 %v1850_v63, %v1849_v8  ;;  %v3674_v38 = vpop.f32.mrb[68].mxu0 }
 0x492   : > { %v1795_v17 = vadd.f32 %v3674_v38, %v4797_v27  ;;  %v1786_v19 = vpop.f32.mrb[69].mxu0 }
 0x493   : > { %v1787_v42 = vadd.f32 %v4797_v27, %v1786_v19  ;;  %v3675_v44 = vpop.f32.mrb[70].mxu0  ;;  %3716 = vmatprep.mubr.bf16.mxu1 %v1873_v16 }
 0x494   : > { %v1798_v36 = vadd.f32 %v3675_v44, %v4797_v27  ;;  %v1789_v43 = vpop.f32.mrb[71].mxu0  ;;  %3717 = vmatmul.mubr.bf16.gmra.mrb[96].mxu1 %v1874_v40  ;;  %v1855_v48 = vmax.f32 %v1795_v17, 0.0 }
 0x495   : > { %v1790_v13 = vadd.f32 %v4797_v27, %v1789_v43  ;;  %v1853_v26 = vmax.f32 %v1787_v42, 0.0 }
 0x496   : > { %v1856_v41 = vmax.f32 %v1798_v36, 0.0 }
 0x497   : > { %v1854_v24 = vmax.f32 %v1790_v13, 0.0 }
 0x498   : > { %v1876_v5 = vpack.c.bf16 %v1856_v41, %v1855_v48 }
 0x499   : > { %v1875_v28 = vpack.c.bf16 %v1854_v24, %v1853_v26  ;;  %v3678_v57 = vpop.f32.mrb[72].mxu0  ;;  %v3968_v24 = vld [vmem:[%s5157_s6 + $0x78] sm:$0xff]  }
 0x49a   : > { %v1811_v55 = vadd.f32 %v3678_v57, %v4797_v27  ;;  %v1802_v52 = vpop.f32.mrb[73].mxu0  ;;  %3746 = vmatprep.subr.bf16.mxu0 %v3968_v24  ;;  %v3972_v57 = vld [vmem:[%s5159_s8 + $0x18] sm:$0xff]  }
 0x49b   : > { %v1803_v58 = vadd.f32 %v4797_v27, %v1802_v52  ;;  %v3679_v30 = vpop.f32.mrb[74].mxu0  ;;  %3720 = vmatprep.mubr.bf16.mxu1 %v1875_v28  ;;  %3747 = vmatpush3.bf16.msra.mxu0 %v3968_v24  ;;  %v3971_v28 = vld [vmem:[%s5159_s8 + $0x10] sm:$0xff]   ;;  %v3974_v52 = vld [vmem:[%s5159_s8 + $0x28] sm:$0xff]  }
 0x49c   : > { %v1814_v22 = vadd.f32 %v3679_v30, %v4797_v27  ;;  %v1805_v29 = vpop.f32.mrb[75].mxu0  ;;  %3721 = vmatmul.mubr.bf16.gmra.mrb[100].mxu1 %v1876_v5  ;;  %v1859_v32 = vmax.f32 %v1811_v55, 0.0  ;;  %v3969_v5 = vld [vmem:[%s5159_s8] sm:$0xff]  }
 0x49d   : > { %v1806_v6 = vadd.f32 %v4797_v27, %v1805_v29  ;;  %v1857_v10 = vmax.f32 %v1803_v58, 0.0  ;;  %3780 = vmatprep.subr.bf16.mxu1 %v3969_v5  ;;  %v3973_v55 = vld [vmem:[%s5159_s8 + $0x20] sm:$0xff]   ;;  %v3975_v58 = vld [vmem:[%s5159_s8 + $0x30] sm:$0xff]  }
 0x49e   : > { %v1860_v12 = vmax.f32 %v1814_v22, 0.0  ;;  %3781 = vmatpush3.bf16.msra.mxu1 %v3969_v5  ;;  %v4858_v30 = vld [vmem:[%s5156_s5 + $0x1] ss:$0 sm:$0xff] }
 0x49f   : > { %v1858_v7 = vmax.f32 %v1806_v6, 0.0 }
 0x4a0   : > { %v1878_v14 = vpack.c.bf16 %v1860_v12, %v1859_v32 }
 0x4a1   : > { %v1877_v8 = vpack.c.bf16 %v1858_v7, %v1857_v10  ;;  %v3682_v63 = vpop.f32.mrb[76].mxu0 }
 0x4a2   : > { %v1827_v40 = vadd.f32 %v3682_v63, %v4797_v27  ;;  %v1818_v16 = vpop.f32.mrb[77].mxu0 }
 0x4a3   : > { %v1819_v38 = vadd.f32 %v4797_v27, %v1818_v16  ;;  %v3683_v17 = vpop.f32.mrb[78].mxu0  ;;  %3724 = vmatprep.mubr.bf16.mxu1 %v1877_v8 }
 0x4a4   : > { %v1830_v19 = vadd.f32 %v3683_v17, %v4797_v27  ;;  %v1821_v42 = vpop.f32.mrb[79].mxu0  ;;  %3725 = vmatmul.mubr.bf16.gmra.mrb[104].mxu1 %v1878_v14  ;;  %v1863_v36 = vmax.f32 %v1827_v40, 0.0 }
 0x4a5   : > { %v1822_v44 = vadd.f32 %v4797_v27, %v1821_v42  ;;  %v1861_v13 = vmax.f32 %v1819_v38, 0.0  ;;  %v3970_v27 = vld [vmem:[%s5159_s8 + $0x8] sm:$0xff]  }
 0x4a6   : > { %v1864_v43 = vmax.f32 %v1830_v19, 0.0  ;;  %3782 = vmatprep.subr.bf16.mxu1 %v3970_v27 }
 0x4a7   : > { %v1862_v48 = vmax.f32 %v1822_v44, 0.0  ;;  %3783 = vmatpush3.bf16.msra.mxu1 %v3970_v27 }
 0x4a8   : > { %v1880_v41 = vpack.c.bf16 %v1864_v43, %v1863_v36  ;;  %3784 = vmatprep.subr.bf16.mxu1 %v3971_v28 }
 0x4a9   : > { %v1879_v26 = vpack.c.bf16 %v1862_v48, %v1861_v13 }
 0x4ab   : > { %3728 = vmatprep.mubr.bf16.mxu1 %v1879_v26  ;;  %3785 = vmatpush3.bf16.msra.mxu1 %v3971_v28 }
 0x4ac   : > { %3729 = vmatmul.mubr.bf16.gmra.mrb[108].mxu1 %v1880_v41  ;;  %3786 = vmatprep.subr.bf16.mxu1 %v3972_v57 }
 0x4af   : > { %3787 = vmatpush3.bf16.msra.mxu1 %v3972_v57 }
 0x4b0   : > { %3788 = vmatprep.subr.bf16.mxu1 %v3973_v55 }
 0x4b3   : > { %3789 = vmatpush3.bf16.msra.mxu1 %v3973_v55 }
 0x4b4   : > { %3790 = vmatprep.subr.bf16.mxu1 %v3974_v52 }
 0x4b7   : > { %3791 = vmatpush3.bf16.msra.mxu1 %v3974_v52 }
 0x4b8   : > { %3792 = vmatprep.subr.bf16.mxu1 %v3975_v58 }
 0x4bb   : > { %3793 = vmatpush3.bf16.msra.mxu1 %v3975_v58 }
 0x547   : > { %v3702_v22 = vpop.f32.mrb[80].mxu1 }
 0x548   : > { %v1997_v29 = vadd.f32 %v3702_v22, %v4858_v30  ;;  %v1988_v6 = vpop.f32.mrb[81].mxu1 }
 0x549   : > { %v1989_v32 = vadd.f32 %v4858_v30, %v1988_v6  ;;  %v3703_v12 = vpop.f32.mrb[82].mxu1 }
 0x54a   : > { %v2000_v10 = vadd.f32 %v3703_v12, %v4858_v30  ;;  %v1991_v7 = vpop.f32.mrb[83].mxu1  ;;  %v2117_v8 = vmax.f32 %v1997_v29, 0.0 }
 0x54b   : > { %v1992_v14 = vadd.f32 %v4858_v30, %v1991_v7  ;;  %v2115_v40 = vmax.f32 %v1989_v32, 0.0 }
 0x54c   : > { %v2118_v63 = vmax.f32 %v2000_v10, 0.0 }
 0x54d   : > { %v2116_v16 = vmax.f32 %v1992_v14, 0.0 }
 0x54e   : > { %v2148_v38 = vpack.c.bf16 %v2118_v63, %v2117_v8 }
 0x54f   : > { %v2147_v17 = vpack.c.bf16 %v2116_v16, %v2115_v40  ;;  %v3706_v19 = vpop.f32.mrb[84].mxu1 }
 0x550   : > { %v2013_v42 = vadd.f32 %v3706_v19, %v4858_v30  ;;  %v2004_v44 = vpop.f32.mrb[85].mxu1 }
 0x551   : > { %v2005_v36 = vadd.f32 %v4858_v30, %v2004_v44  ;;  %v3707_v43 = vpop.f32.mrb[86].mxu1  ;;  %3748 = vmatprep.mubr.bf16.mxu0 %v2147_v17 }
 0x552   : > { %v2016_v13 = vadd.f32 %v3707_v43, %v4858_v30  ;;  %v2007_v48 = vpop.f32.mrb[87].mxu1  ;;  %3749 = vmatmul.mubr.bf16.vlgmr.msra.gmra.mrb[80].mxu0 %v2148_v38  ;;  %v2121_v26 = vmax.f32 %v2013_v42, 0.0 }
 0x553   : > { %v2008_v41 = vadd.f32 %v4858_v30, %v2007_v48  ;;  %v2119_v5 = vmax.f32 %v2005_v36, 0.0 }
 0x554   : > { %v2122_v24 = vmax.f32 %v2016_v13, 0.0 }
 0x555   : > { %v2120_v27 = vmax.f32 %v2008_v41, 0.0 }
 0x556   : > { %v2150_v28 = vpack.c.bf16 %v2122_v24, %v2121_v26 }
 0x557   : > { %v2149_v57 = vpack.c.bf16 %v2120_v27, %v2119_v5  ;;  %v3710_v55 = vpop.f32.mrb[88].mxu1 }
 0x558   : > { %v2029_v52 = vadd.f32 %v3710_v55, %v4858_v30  ;;  %v2020_v58 = vpop.f32.mrb[89].mxu1 }
 0x559   : > { %v2021_v22 = vadd.f32 %v4858_v30, %v2020_v58  ;;  %v3711_v29 = vpop.f32.mrb[90].mxu1  ;;  %3752 = vmatprep.mubr.bf16.mxu0 %v2149_v57 }
 0x55a   : > { %v2032_v6 = vadd.f32 %v3711_v29, %v4858_v30  ;;  %v2023_v32 = vpop.f32.mrb[91].mxu1  ;;  %3753 = vmatmul.mubr.bf16.gmra.mrb[84].mxu0 %v2150_v28  ;;  %v2125_v10 = vmax.f32 %v2029_v52, 0.0 }
 0x55b   : > { %v2024_v12 = vadd.f32 %v4858_v30, %v2023_v32  ;;  %v2123_v14 = vmax.f32 %v2021_v22, 0.0 }
 0x55c   : > { %v2126_v7 = vmax.f32 %v2032_v6, 0.0 }
 0x55d   : > { %v2124_v8 = vmax.f32 %v2024_v12, 0.0 }
 0x55e   : > { %v2152_v63 = vpack.c.bf16 %v2126_v7, %v2125_v10 }
 0x55f   : > { %v2151_v40 = vpack.c.bf16 %v2124_v8, %v2123_v14  ;;  %v3714_v16 = vpop.f32.mrb[92].mxu1 }
 0x560   : > { %v2045_v38 = vadd.f32 %v3714_v16, %v4858_v30  ;;  %v2036_v17 = vpop.f32.mrb[93].mxu1 }
 0x561   : > { %v2037_v19 = vadd.f32 %v4858_v30, %v2036_v17  ;;  %v3715_v42 = vpop.f32.mrb[94].mxu1  ;;  %3756 = vmatprep.mubr.bf16.mxu0 %v2151_v40 }
 0x562   : > { %v2048_v44 = vadd.f32 %v3715_v42, %v4858_v30  ;;  %v2039_v36 = vpop.f32.mrb[95].mxu1  ;;  %3757 = vmatmul.mubr.bf16.gmra.mrb[88].mxu0 %v2152_v63  ;;  %v2129_v13 = vmax.f32 %v2045_v38, 0.0 }
 0x563   : > { %v2040_v43 = vadd.f32 %v4858_v30, %v2039_v36  ;;  %v2127_v41 = vmax.f32 %v2037_v19, 0.0 }
 0x564   : > { %v2130_v48 = vmax.f32 %v2048_v44, 0.0 }
 0x565   : > { %v2128_v26 = vmax.f32 %v2040_v43, 0.0 }
 0x566   : > { %v2154_v24 = vpack.c.bf16 %v2130_v48, %v2129_v13 }
 0x567   : > { %v2153_v5 = vpack.c.bf16 %v2128_v26, %v2127_v41  ;;  %v3718_v27 = vpop.f32.mrb[96].mxu1 }
 0x568   : > { %v2061_v28 = vadd.f32 %v3718_v27, %v4858_v30  ;;  %v2052_v57 = vpop.f32.mrb[97].mxu1 }
 0x569   : > { %v2053_v55 = vadd.f32 %v4858_v30, %v2052_v57  ;;  %v3719_v52 = vpop.f32.mrb[98].mxu1  ;;  %3760 = vmatprep.mubr.bf16.mxu0 %v2153_v5 }
 0x56a   : > { %v2064_v58 = vadd.f32 %v3719_v52, %v4858_v30  ;;  %v2055_v22 = vpop.f32.mrb[99].mxu1  ;;  %3761 = vmatmul.mubr.bf16.gmra.mrb[92].mxu0 %v2154_v24  ;;  %v2133_v6 = vmax.f32 %v2061_v28, 0.0 }
 0x56b   : > { %v2056_v29 = vadd.f32 %v4858_v30, %v2055_v22  ;;  %v2131_v12 = vmax.f32 %v2053_v55, 0.0 }
 0x56c   : > { %v2134_v32 = vmax.f32 %v2064_v58, 0.0 }
 0x56d   : > { %v2132_v10 = vmax.f32 %v2056_v29, 0.0 }
 0x56e   : > { %v2156_v7 = vpack.c.bf16 %v2134_v32, %v2133_v6 }
 0x56f   : > { %v2155_v14 = vpack.c.bf16 %v2132_v10, %v2131_v12  ;;  %v3722_v8 = vpop.f32.mrb[100].mxu1 }
 0x570   : > { %v2077_v63 = vadd.f32 %v3722_v8, %v4858_v30  ;;  %v2068_v40 = vpop.f32.mrb[101].mxu1 }
 0x571   : > { %v2069_v16 = vadd.f32 %v4858_v30, %v2068_v40  ;;  %v3723_v38 = vpop.f32.mrb[102].mxu1  ;;  %3764 = vmatprep.mubr.bf16.mxu0 %v2155_v14 }
 0x572   : > { %v2080_v17 = vadd.f32 %v3723_v38, %v4858_v30  ;;  %v2071_v19 = vpop.f32.mrb[103].mxu1  ;;  %3765 = vmatmul.mubr.bf16.gmra.mrb[96].mxu0 %v2156_v7  ;;  %v2137_v44 = vmax.f32 %v2077_v63, 0.0 }
 0x573   : > { %v2072_v42 = vadd.f32 %v4858_v30, %v2071_v19  ;;  %v2135_v43 = vmax.f32 %v2069_v16, 0.0 }
 0x574   : > { %v2138_v36 = vmax.f32 %v2080_v17, 0.0 }
 0x575   : > { %v2136_v13 = vmax.f32 %v2072_v42, 0.0 }
 0x576   : > { %v2158_v48 = vpack.c.bf16 %v2138_v36, %v2137_v44 }
 0x577   : > { %v2157_v41 = vpack.c.bf16 %v2136_v13, %v2135_v43  ;;  %v3726_v26 = vpop.f32.mrb[104].mxu1  ;;  %v3976_v13 = vld [vmem:[%s5159_s8 + $0x38] sm:$0xff]  }
 0x578   : > { %v2093_v24 = vadd.f32 %v3726_v26, %v4858_v30  ;;  %v2084_v5 = vpop.f32.mrb[105].mxu1  ;;  %3794 = vmatprep.subr.bf16.mxu1 %v3976_v13  ;;  %v3980_v26 = vld [vmem:[%s5161_s10 + $0x18] sm:$0xff]  }
 0x579   : > { %v2085_v27 = vadd.f32 %v4858_v30, %v2084_v5  ;;  %v3727_v28 = vpop.f32.mrb[106].mxu1  ;;  %3768 = vmatprep.mubr.bf16.mxu0 %v2157_v41  ;;  %3795 = vmatpush3.bf16.msra.mxu1 %v3976_v13  ;;  %v3979_v41 = vld [vmem:[%s5161_s10 + $0x10] sm:$0xff]   ;;  %v3982_v5 = vld [vmem:[%s5161_s10 + $0x28] sm:$0xff]  }
 0x57a   : > { %v2096_v57 = vadd.f32 %v3727_v28, %v4858_v30  ;;  %v2087_v55 = vpop.f32.mrb[107].mxu1  ;;  %3769 = vmatmul.mubr.bf16.gmra.mrb[100].mxu0 %v2158_v48  ;;  %v2141_v58 = vmax.f32 %v2093_v24, 0.0  ;;  %v3977_v48 = vld [vmem:[%s5161_s10] sm:$0xff]  }
 0x57b   : > { %v2088_v52 = vadd.f32 %v4858_v30, %v2087_v55  ;;  %v2139_v29 = vmax.f32 %v2085_v27, 0.0  ;;  %3828 = vmatprep.subr.bf16.mxu0 %v3977_v48  ;;  %v3981_v24 = vld [vmem:[%s5161_s10 + $0x20] sm:$0xff]   ;;  %v3983_v27 = vld [vmem:[%s5161_s10 + $0x30] sm:$0xff]  }
 0x57c   : > { %v2142_v22 = vmax.f32 %v2096_v57, 0.0  ;;  %3829 = vmatpush3.bf16.msra.mxu0 %v3977_v48  ;;  %v4919_v28 = vld [vmem:[%s5158_s7 + $0x1] ss:$0 sm:$0xff] }
 0x57d   : > { %v2140_v6 = vmax.f32 %v2088_v52, 0.0 }
 0x57e   : > { %v2160_v32 = vpack.c.bf16 %v2142_v22, %v2141_v58 }
 0x57f   : > { %v2159_v12 = vpack.c.bf16 %v2140_v6, %v2139_v29  ;;  %v3730_v10 = vpop.f32.mrb[108].mxu1 }
 0x580   : > { %v2109_v7 = vadd.f32 %v3730_v10, %v4858_v30  ;;  %v2100_v14 = vpop.f32.mrb[109].mxu1 }
 0x581   : > { %v2101_v8 = vadd.f32 %v4858_v30, %v2100_v14  ;;  %v3731_v63 = vpop.f32.mrb[110].mxu1  ;;  %3772 = vmatprep.mubr.bf16.mxu0 %v2159_v12 }
 0x582   : > { %v2112_v40 = vadd.f32 %v3731_v63, %v4858_v30  ;;  %v2103_v16 = vpop.f32.mrb[111].mxu1  ;;  %3773 = vmatmul.mubr.bf16.gmra.mrb[104].mxu0 %v2160_v32  ;;  %v2145_v17 = vmax.f32 %v2109_v7, 0.0 }
 0x583   : > { %v2104_v38 = vadd.f32 %v4858_v30, %v2103_v16  ;;  %v2143_v42 = vmax.f32 %v2101_v8, 0.0  ;;  %v3978_v30 = vld [vmem:[%s5161_s10 + $0x8] sm:$0xff]  }
 0x584   : > { %v2146_v19 = vmax.f32 %v2112_v40, 0.0  ;;  %3830 = vmatprep.subr.bf16.mxu0 %v3978_v30 }
 0x585   : > { %v2144_v44 = vmax.f32 %v2104_v38, 0.0  ;;  %3831 = vmatpush3.bf16.msra.mxu0 %v3978_v30 }
 0x586   : > { %v2162_v36 = vpack.c.bf16 %v2146_v19, %v2145_v17  ;;  %3832 = vmatprep.subr.bf16.mxu0 %v3979_v41 }
 0x587   : > { %v2161_v43 = vpack.c.bf16 %v2144_v44, %v2143_v42 }
 0x589   : > { %3776 = vmatprep.mubr.bf16.mxu0 %v2161_v43  ;;  %3833 = vmatpush3.bf16.msra.mxu0 %v3979_v41 }
 0x58a   : > { %3777 = vmatmul.mubr.bf16.gmra.mrb[108].mxu0 %v2162_v36  ;;  %3834 = vmatprep.subr.bf16.mxu0 %v3980_v26 }
 0x58d   : > { %3835 = vmatpush3.bf16.msra.mxu0 %v3980_v26 }
 0x58e   : > { %3836 = vmatprep.subr.bf16.mxu0 %v3981_v24 }
 0x591   : > { %3837 = vmatpush3.bf16.msra.mxu0 %v3981_v24 }
 0x592   : > { %3838 = vmatprep.subr.bf16.mxu0 %v3982_v5 }
 0x595   : > { %3839 = vmatpush3.bf16.msra.mxu0 %v3982_v5 }
 0x596   : > { %3840 = vmatprep.subr.bf16.mxu0 %v3983_v27 }
 0x599   : > { %3841 = vmatpush3.bf16.msra.mxu0 %v3983_v27 }
 0x625   : > { %v3750_v57 = vpop.f32.mrb[80].mxu0 }
 0x626   : > { %v2279_v55 = vadd.f32 %v3750_v57, %v4919_v28  ;;  %v2270_v52 = vpop.f32.mrb[81].mxu0 }
 0x627   : > { %v2271_v58 = vadd.f32 %v4919_v28, %v2270_v52  ;;  %v3751_v22 = vpop.f32.mrb[82].mxu0 }
 0x628   : > { %v2399_v29 = vmax.f32 %v2279_v55, 0.0  ;;  %v2282_v6 = vadd.f32 %v3751_v22, %v4919_v28  ;;  %v2273_v32 = vpop.f32.mrb[83].mxu0 }
 0x629   : > { %v2397_v12 = vmax.f32 %v2271_v58, 0.0  ;;  %v2274_v10 = vadd.f32 %v4919_v28, %v2273_v32 }
 0x62a   : > { %v2400_v7 = vmax.f32 %v2282_v6, 0.0  ;;  %v2431_v8 = vadd.f32 %v2399_v29, %v4596_v54 }
 0x62b   : > { %v2398_v14 = vmax.f32 %v2274_v10, 0.0  ;;  %v2429_v40 = vadd.f32 %v2397_v12, %v4588_v25 }
 0x62c   : > { %v2432_v63 = vadd.f32 %v2400_v7, %v4584_v47 }
 0x62d   : > { %v2430_v16 = vadd.f32 %v2398_v14, %v4592_v62  ;;  %v3754_v38 = vpop.f32.mrb[84].mxu0 }
 0x62e   : > { %v2462_v17 = vpack.c.bf16 %v2432_v63, %v2431_v8  ;;  %v2295_v19 = vadd.f32 %v3754_v38, %v4919_v28  ;;  %v2286_v42 = vpop.f32.mrb[85].mxu0 }
 0x62f   : > { %v2287_v44 = vadd.f32 %v4919_v28, %v2286_v42  ;;  %v3755_v36 = vpop.f32.mrb[86].mxu0  ;;  %v2461_v43 = vpack.c.bf16 %v2430_v16, %v2429_v40 }
 0x630   : > { %v2403_v13 = vmax.f32 %v2295_v19, 0.0  ;;  %v2298_v48 = vadd.f32 %v3755_v36, %v4919_v28  ;;  %v2289_v30 = vpop.f32.mrb[87].mxu0 }
 0x631   : > { %v2401_v54 = vmax.f32 %v2287_v44, 0.0  ;;  %v2290_v47 = vadd.f32 %v4919_v28, %v2289_v30  ;;  %3796 = vmatprep.mubr.bf16.mxu1 %v2461_v43 }
 0x632   : > { %v2404_v25 = vmax.f32 %v2298_v48, 0.0  ;;  %3797 = vmatmul.mubr.bf16.vlgmr.msra.gmra.mrb[112].mxu1 %v2462_v17  ;;  %v2435_v41 = vadd.f32 %v2403_v13, %v4620_v56 }
 0x633   : > { %v2402_v62 = vmax.f32 %v2290_v47, 0.0  ;;  %v2433_v24 = vadd.f32 %v2401_v54, %v4612_v60 }
 0x634   : > { %v2436_v26 = vadd.f32 %v2404_v25, %v4608_v9 }
 0x635   : > { %v2434_v5 = vadd.f32 %v2402_v62, %v4616_v37  ;;  %v3758_v27 = vpop.f32.mrb[88].mxu0 }
 0x636   : > { %v2311_v57 = vadd.f32 %v3758_v27, %v4919_v28  ;;  %v2302_v55 = vpop.f32.mrb[89].mxu0  ;;  %v2464_v52 = vpack.c.bf16 %v2436_v26, %v2435_v41 }
 0x637   : > { %v2303_v58 = vadd.f32 %v4919_v28, %v2302_v55  ;;  %v3759_v22 = vpop.f32.mrb[90].mxu0  ;;  %v2463_v29 = vpack.c.bf16 %v2434_v5, %v2433_v24 }
 0x638   : > { %v2407_v6 = vmax.f32 %v2311_v57, 0.0  ;;  %v2314_v32 = vadd.f32 %v3759_v22, %v4919_v28  ;;  %v2305_v12 = vpop.f32.mrb[91].mxu0 }
 0x639   : > { %v2405_v56 = vmax.f32 %v2303_v58, 0.0  ;;  %v2306_v9 = vadd.f32 %v4919_v28, %v2305_v12  ;;  %3800 = vmatprep.mubr.bf16.mxu1 %v2463_v29 }
 0x63a   : > { %v2408_v60 = vmax.f32 %v2314_v32, 0.0  ;;  %3801 = vmatmul.mubr.bf16.gmra.mrb[116].mxu1 %v2464_v52  ;;  %v2439_v10 = vadd.f32 %v2407_v6, %v4644_v1 }
 0x63b   : > { %v2406_v37 = vmax.f32 %v2306_v9, 0.0  ;;  %v2437_v14 = vadd.f32 %v2405_v56, %v4636_v23 }
 0x63c   : > { %v2440_v7 = vadd.f32 %v2408_v60, %v4632_v61 }
 0x63d   : > { %v2438_v8 = vadd.f32 %v2406_v37, %v4640_v2  ;;  %v3762_v63 = vpop.f32.mrb[92].mxu0 }
 0x63e   : > { %v2327_v40 = vadd.f32 %v3762_v63, %v4919_v28  ;;  %v2318_v16 = vpop.f32.mrb[93].mxu0  ;;  %v2466_v38 = vpack.c.bf16 %v2440_v7, %v2439_v10 }
 0x63f   : > { %v2319_v17 = vadd.f32 %v4919_v28, %v2318_v16  ;;  %v3763_v19 = vpop.f32.mrb[94].mxu0  ;;  %v2465_v42 = vpack.c.bf16 %v2438_v8, %v2437_v14 }
 0x640   : > { %v2411_v44 = vmax.f32 %v2327_v40, 0.0  ;;  %v2330_v36 = vadd.f32 %v3763_v19, %v4919_v28  ;;  %v2321_v43 = vpop.f32.mrb[95].mxu0 }
 0x641   : > { %v2409_v1 = vmax.f32 %v2319_v17, 0.0  ;;  %v2322_v61 = vadd.f32 %v4919_v28, %v2321_v43  ;;  %3804 = vmatprep.mubr.bf16.mxu1 %v2465_v42 }
 0x642   : > { %v2412_v23 = vmax.f32 %v2330_v36, 0.0  ;;  %3805 = vmatmul.mubr.bf16.gmra.mrb[120].mxu1 %v2466_v38  ;;  %v2443_v13 = vadd.f32 %v2411_v44, %v4668_v15 }
 0x643   : > { %v2410_v2 = vmax.f32 %v2322_v61, 0.0  ;;  %v2441_v30 = vadd.f32 %v2409_v1, %v4660_v50 }
 0x644   : > { %v2444_v48 = vadd.f32 %v2412_v23, %v4656_v11 }
 0x645   : > { %v2442_v54 = vadd.f32 %v2410_v2, %v4664_v45  ;;  %v3766_v47 = vpop.f32.mrb[96].mxu0 }
 0x646   : > { %v2343_v25 = vadd.f32 %v3766_v47, %v4919_v28  ;;  %v2334_v62 = vpop.f32.mrb[97].mxu0  ;;  %v2468_v41 = vpack.c.bf16 %v2444_v48, %v2443_v13 }
 0x647   : > { %v2335_v26 = vadd.f32 %v4919_v28, %v2334_v62  ;;  %v3767_v24 = vpop.f32.mrb[98].mxu0  ;;  %v2467_v5 = vpack.c.bf16 %v2442_v54, %v2441_v30 }
 0x648   : > { %v2415_v27 = vmax.f32 %v2343_v25, 0.0  ;;  %v2346_v57 = vadd.f32 %v3767_v24, %v4919_v28  ;;  %v2337_v55 = vpop.f32.mrb[99].mxu0 }
 0x649   : > { %v2413_v15 = vmax.f32 %v2335_v26, 0.0  ;;  %v2338_v11 = vadd.f32 %v4919_v28, %v2337_v55  ;;  %3808 = vmatprep.mubr.bf16.mxu1 %v2467_v5 }
 0x64a   : > { %v2416_v50 = vmax.f32 %v2346_v57, 0.0  ;;  %3809 = vmatmul.mubr.bf16.gmra.mrb[124].mxu1 %v2468_v41  ;;  %v2447_v52 = vadd.f32 %v2415_v27, %v4692_v34 }
 0x64b   : > { %v2414_v45 = vmax.f32 %v2338_v11, 0.0  ;;  %v2445_v22 = vadd.f32 %v2413_v15, %v4684_v31 }
 0x64c   : > { %v2448_v58 = vadd.f32 %v2416_v50, %v4680_v4 }
 0x64d   : > { %v2446_v29 = vadd.f32 %v2414_v45, %v4688_v33  ;;  %v3770_v6 = vpop.f32.mrb[100].mxu0 }
 0x64e   : > { %v2359_v32 = vadd.f32 %v3770_v6, %v4919_v28  ;;  %v2350_v12 = vpop.f32.mrb[101].mxu0  ;;  %v2470_v56 = vpack.c.bf16 %v2448_v58, %v2447_v52 }
 0x64f   : > { %v2351_v9 = vadd.f32 %v4919_v28, %v2350_v12  ;;  %v3771_v60 = vpop.f32.mrb[102].mxu0  ;;  %v2469_v37 = vpack.c.bf16 %v2446_v29, %v2445_v22 }
 0x650   : > { %v2419_v10 = vmax.f32 %v2359_v32, 0.0  ;;  %v2362_v7 = vadd.f32 %v3771_v60, %v4919_v28  ;;  %v2353_v14 = vpop.f32.mrb[103].mxu0 }
 0x651   : > { %v2417_v34 = vmax.f32 %v2351_v9, 0.0  ;;  %v2354_v4 = vadd.f32 %v4919_v28, %v2353_v14  ;;  %3812 = vmatprep.mubr.bf16.mxu1 %v2469_v37 }
 0x652   : > { %v2420_v31 = vmax.f32 %v2362_v7, 0.0  ;;  %3813 = vmatmul.mubr.bf16.gmra.mrb[128].mxu1 %v2470_v56  ;;  %v2451_v8 = vadd.f32 %v2419_v10, %v4716_v21 }
 0x653   : > { %v2418_v33 = vmax.f32 %v2354_v4, 0.0  ;;  %v2449_v40 = vadd.f32 %v2417_v34, %v4708_v18 }
 0x654   : > { %v2452_v63 = vadd.f32 %v2420_v31, %v4704_v59 }
 0x655   : > { %v2450_v16 = vadd.f32 %v2418_v33, %v4712_v20  ;;  %v3774_v38 = vpop.f32.mrb[104].mxu0 }
 0x656   : > { %v2375_v17 = vadd.f32 %v3774_v38, %v4919_v28  ;;  %v2366_v19 = vpop.f32.mrb[105].mxu0  ;;  %v2472_v42 = vpack.c.bf16 %v2452_v63, %v2451_v8 }
 0x657   : > { %v2367_v44 = vadd.f32 %v4919_v28, %v2366_v19  ;;  %v3775_v36 = vpop.f32.mrb[106].mxu0  ;;  %v2471_v43 = vpack.c.bf16 %v2450_v16, %v2449_v40 }
 0x658   : > { %v2423_v1 = vmax.f32 %v2375_v17, 0.0  ;;  %v2378_v61 = vadd.f32 %v3775_v36, %v4919_v28  ;;  %v2369_v23 = vpop.f32.mrb[107].mxu0 }
 0x659   : > { %v2421_v21 = vmax.f32 %v2367_v44, 0.0  ;;  %v2370_v59 = vadd.f32 %v4919_v28, %v2369_v23  ;;  %3816 = vmatprep.mubr.bf16.mxu1 %v2471_v43 }
 0x65a   : > { %v2424_v18 = vmax.f32 %v2378_v61, 0.0  ;;  %3817 = vmatmul.mubr.bf16.gmra.mrb[132].mxu1 %v2472_v42  ;;  %v2455_v2 = vadd.f32 %v2423_v1, %v4740_v49 }
 0x65b   : > { %v2422_v20 = vmax.f32 %v2370_v59, 0.0  ;;  %v2453_v48 = vadd.f32 %v2421_v21, %v4732_v39 }
 0x65c   : > { %v2456_v13 = vadd.f32 %v2424_v18, %v4728_v35 }
 0x65d   : > { %v2454_v30 = vadd.f32 %v2422_v20, %v4736_v0  ;;  %v3778_v54 = vpop.f32.mrb[108].mxu0 }
 0x65e   : > { %v2391_v47 = vadd.f32 %v3778_v54, %v4919_v28  ;;  %v2382_v25 = vpop.f32.mrb[109].mxu0  ;;  %v2474_v62 = vpack.c.bf16 %v2456_v13, %v2455_v2 }
 0x65f   : > { %v2383_v41 = vadd.f32 %v4919_v28, %v2382_v25  ;;  %v3779_v26 = vpop.f32.mrb[110].mxu0  ;;  %v2473_v24 = vpack.c.bf16 %v2454_v30, %v2453_v48 }
 0x660   : > { %v2427_v5 = vmax.f32 %v2391_v47, 0.0  ;;  %v2394_v27 = vadd.f32 %v3779_v26, %v4919_v28  ;;  %v2385_v57 = vpop.f32.mrb[111].mxu0 }
 0x661   : > { %v2425_v49 = vmax.f32 %v2383_v41, 0.0  ;;  %v2386_v35 = vadd.f32 %v4919_v28, %v2385_v57  ;;  %3820 = vmatprep.mubr.bf16.mxu1 %v2473_v24  ;;  %v3984_v28 = vld [vmem:[%s5161_s10 + $0x38] sm:$0xff]  }
 0x662   : > { %v2428_v39 = vmax.f32 %v2394_v27, 0.0  ;;  %3821 = vmatmul.mubr.bf16.gmra.mrb[136].mxu1 %v2474_v62  ;;  %v2459_v55 = vadd.f32 %v2427_v5, %v4764_v51  ;;  %3842 = vmatprep.subr.bf16.mxu0 %v3984_v28  ;;  %v4991_v51 = vld [vmem:[%s5160_s9] ss:$0 sm:$0xff] }
 0x663   : > { %v2426_v0 = vmax.f32 %v2386_v35, 0.0  ;;  %v2457_v11 = vadd.f32 %v2425_v49, %v4756_v53  ;;  %3843 = vmatpush3.bf16.msra.mxu0 %v3984_v28 }
 0x664   : > { %v2460_v15 = vadd.f32 %v2428_v39, %v4752_v46 }
 0x665   : > { %v2458_v50 = vadd.f32 %v2426_v0, %v4760_v3 }
 0x666   : > { %v2476_v45 = vpack.c.bf16 %v2460_v15, %v2459_v55 }
 0x667   : > { %v2475_v52 = vpack.c.bf16 %v2458_v50, %v2457_v11 }
 0x669   : > { %3824 = vmatprep.mubr.bf16.mxu1 %v2475_v52 }
 0x66a   : > { %3825 = vmatmul.mubr.bf16.gmra.mrb[140].mxu1 %v2476_v45 }
 0x705   : > { %v3798_v46 = vpop.f32.mrb[112].mxu1 }
 0x706   : > { %v2591_v53 = vadd.f32 %v3798_v46, %v4991_v51  ;;  %v2582_v58 = vpop.f32.mrb[113].mxu1 }
 0x707   : > { %v2583_v3 = vadd.f32 %v4991_v51, %v2582_v58  ;;  %v3799_v22 = vpop.f32.mrb[114].mxu1 }
 0x708   : > { %v2594_v29 = vadd.f32 %v3799_v22, %v4991_v51  ;;  %v2585_v6 = vpop.f32.mrb[115].mxu1  ;;  %v2711_v12 = vmax.f32 %v2591_v53, 0.0 }
 0x709   : > { %v2586_v32 = vadd.f32 %v4991_v51, %v2585_v6  ;;  %v2709_v9 = vmax.f32 %v2583_v3, 0.0 }
 0x70a   : > { %v2712_v56 = vmax.f32 %v2594_v29, 0.0 }
 0x70b   : > { %v2710_v60 = vmax.f32 %v2586_v32, 0.0 }
 0x70c   : > { %v2742_v37 = vpack.c.bf16 %v2712_v56, %v2711_v12 }
 0x70d   : > { %v2741_v10 = vpack.c.bf16 %v2710_v60, %v2709_v9  ;;  %v3802_v7 = vpop.f32.mrb[116].mxu1 }
 0x70e   : > { %v2607_v14 = vadd.f32 %v3802_v7, %v4991_v51  ;;  %v2598_v34 = vpop.f32.mrb[117].mxu1 }
 0x70f   : > { %v2599_v4 = vadd.f32 %v4991_v51, %v2598_v34  ;;  %v3803_v31 = vpop.f32.mrb[118].mxu1  ;;  %3844 = vmatprep.mubr.bf16.mxu0 %v2741_v10 }
 0x710   : > { %v2610_v33 = vadd.f32 %v3803_v31, %v4991_v51  ;;  %v2601_v8 = vpop.f32.mrb[119].mxu1  ;;  %3845 = vmatmul.mubr.bf16.vlgmr.msra.gmra.mrb[112].mxu0 %v2742_v37  ;;  %v2715_v40 = vmax.f32 %v2607_v14, 0.0 }
 0x711   : > { %v2602_v63 = vadd.f32 %v4991_v51, %v2601_v8  ;;  %v2713_v38 = vmax.f32 %v2599_v4, 0.0 }
 0x712   : > { %v2716_v16 = vmax.f32 %v2610_v33, 0.0 }
 0x713   : > { %v2714_v17 = vmax.f32 %v2602_v63, 0.0 }
 0x714   : > { %v2744_v19 = vpack.c.bf16 %v2716_v16, %v2715_v40 }
 0x715   : > { %v2743_v42 = vpack.c.bf16 %v2714_v17, %v2713_v38  ;;  %v3806_v44 = vpop.f32.mrb[120].mxu1 }
 0x716   : > { %v2623_v36 = vadd.f32 %v3806_v44, %v4991_v51  ;;  %v2614_v43 = vpop.f32.mrb[121].mxu1 }
 0x717   : > { %v2615_v1 = vadd.f32 %v4991_v51, %v2614_v43  ;;  %v3807_v61 = vpop.f32.mrb[122].mxu1  ;;  %3848 = vmatprep.mubr.bf16.mxu0 %v2743_v42 }
 0x718   : > { %v2626_v23 = vadd.f32 %v3807_v61, %v4991_v51  ;;  %v2617_v21 = vpop.f32.mrb[123].mxu1  ;;  %3849 = vmatmul.mubr.bf16.gmra.mrb[116].mxu0 %v2744_v19  ;;  %v2719_v18 = vmax.f32 %v2623_v36, 0.0 }
 0x719   : > { %v2618_v59 = vadd.f32 %v4991_v51, %v2617_v21  ;;  %v2717_v2 = vmax.f32 %v2615_v1, 0.0 }
 0x71a   : > { %v2720_v20 = vmax.f32 %v2626_v23, 0.0 }
 0x71b   : > { %v2718_v13 = vmax.f32 %v2618_v59, 0.0 }
 0x71c   : > { %v2746_v48 = vpack.c.bf16 %v2720_v20, %v2719_v18 }
 0x71d   : > { %v2745_v30 = vpack.c.bf16 %v2718_v13, %v2717_v2  ;;  %v3810_v54 = vpop.f32.mrb[124].mxu1 }
 0x71e   : > { %v2639_v47 = vadd.f32 %v3810_v54, %v4991_v51  ;;  %v2630_v25 = vpop.f32.mrb[125].mxu1 }
 0x71f   : > { %v2631_v62 = vadd.f32 %v4991_v51, %v2630_v25  ;;  %v3811_v41 = vpop.f32.mrb[126].mxu1  ;;  %3852 = vmatprep.mubr.bf16.mxu0 %v2745_v30 }
 0x720   : > { %v2642_v26 = vadd.f32 %v3811_v41, %v4991_v51  ;;  %v2633_v24 = vpop.f32.mrb[127].mxu1  ;;  %3853 = vmatmul.mubr.bf16.gmra.mrb[120].mxu0 %v2746_v48  ;;  %v2723_v27 = vmax.f32 %v2639_v47, 0.0 }
 0x721   : > { %v2634_v5 = vadd.f32 %v4991_v51, %v2633_v24  ;;  %v2721_v49 = vmax.f32 %v2631_v62, 0.0 }
 0x722   : > { %v2724_v57 = vmax.f32 %v2642_v26, 0.0 }
 0x723   : > { %v2722_v35 = vmax.f32 %v2634_v5, 0.0  ;;  %v5031_v5 = vld [vmem:[%s5162_s11] ss:$0 sm:$0xff] }
 0x724   : > { %v2748_v39 = vpack.c.bf16 %v2724_v57, %v2723_v27 }
 0x725   : > { %v2747_v0 = vpack.c.bf16 %v2722_v35, %v2721_v49  ;;  %v3814_v55 = vpop.f32.mrb[128].mxu1 }
 0x726   : > { %v2655_v15 = vadd.f32 %v3814_v55, %v4991_v51  ;;  %v2646_v11 = vpop.f32.mrb[129].mxu1 }
 0x727   : > { %v2647_v50 = vadd.f32 %v4991_v51, %v2646_v11  ;;  %v3815_v45 = vpop.f32.mrb[130].mxu1  ;;  %3856 = vmatprep.mubr.bf16.mxu0 %v2747_v0 }
 0x728   : > { %v2658_v52 = vadd.f32 %v3815_v45, %v4991_v51  ;;  %v2649_v28 = vpop.f32.mrb[131].mxu1  ;;  %3857 = vmatmul.mubr.bf16.gmra.mrb[124].mxu0 %v2748_v39  ;;  %v2727_v53 = vmax.f32 %v2655_v15, 0.0 }
 0x729   : > { %v2650_v46 = vadd.f32 %v4991_v51, %v2649_v28  ;;  %v2725_v3 = vmax.f32 %v2647_v50, 0.0 }
 0x72a   : > { %v2728_v58 = vmax.f32 %v2658_v52, 0.0 }
 0x72b   : > { %v2726_v22 = vmax.f32 %v2650_v46, 0.0 }
 0x72c   : > { %v2750_v29 = vpack.c.bf16 %v2728_v58, %v2727_v53 }
 0x72d   : > { %v2749_v6 = vpack.c.bf16 %v2726_v22, %v2725_v3  ;;  %v3818_v32 = vpop.f32.mrb[132].mxu1 }
 0x72e   : > { %v2671_v12 = vadd.f32 %v3818_v32, %v4991_v51  ;;  %v2662_v56 = vpop.f32.mrb[133].mxu1 }
 0x72f   : > { %v2663_v9 = vadd.f32 %v4991_v51, %v2662_v56  ;;  %v3819_v60 = vpop.f32.mrb[134].mxu1  ;;  %3860 = vmatprep.mubr.bf16.mxu0 %v2749_v6 }
 0x730   : > { %v2674_v37 = vadd.f32 %v3819_v60, %v4991_v51  ;;  %v2665_v10 = vpop.f32.mrb[135].mxu1  ;;  %3861 = vmatmul.mubr.bf16.gmra.mrb[128].mxu0 %v2750_v29  ;;  %v2731_v14 = vmax.f32 %v2671_v12, 0.0 }
 0x731   : > { %v2666_v7 = vadd.f32 %v4991_v51, %v2665_v10  ;;  %v2729_v4 = vmax.f32 %v2663_v9, 0.0 }
 0x732   : > { %v2732_v34 = vmax.f32 %v2674_v37, 0.0 }
 0x733   : > { %v2730_v31 = vmax.f32 %v2666_v7, 0.0 }
 0x734   : > { %v2752_v33 = vpack.c.bf16 %v2732_v34, %v2731_v14 }
 0x735   : > { %v2751_v8 = vpack.c.bf16 %v2730_v31, %v2729_v4  ;;  %v3822_v63 = vpop.f32.mrb[136].mxu1 }
 0x736   : > { %v2687_v40 = vadd.f32 %v3822_v63, %v4991_v51  ;;  %v2678_v16 = vpop.f32.mrb[137].mxu1 }
 0x737   : > { %v2679_v38 = vadd.f32 %v4991_v51, %v2678_v16  ;;  %v3823_v17 = vpop.f32.mrb[138].mxu1  ;;  %3864 = vmatprep.mubr.bf16.mxu0 %v2751_v8 }
 0x738   : > { %v2690_v19 = vadd.f32 %v3823_v17, %v4991_v51  ;;  %v2681_v42 = vpop.f32.mrb[139].mxu1  ;;  %3865 = vmatmul.mubr.bf16.gmra.mrb[132].mxu0 %v2752_v33  ;;  %v2735_v36 = vmax.f32 %v2687_v40, 0.0 }
 0x739   : > { %v2682_v44 = vadd.f32 %v4991_v51, %v2681_v42  ;;  %v2733_v1 = vmax.f32 %v2679_v38, 0.0 }
 0x73a   : > { %v2736_v43 = vmax.f32 %v2690_v19, 0.0 }
 0x73b   : > { %v2734_v61 = vmax.f32 %v2682_v44, 0.0 }
 0x73c   : > { %v2754_v23 = vpack.c.bf16 %v2736_v43, %v2735_v36 }
 0x73d   : > { %v2753_v21 = vpack.c.bf16 %v2734_v61, %v2733_v1  ;;  %v3826_v59 = vpop.f32.mrb[140].mxu1 }
 0x73e   : > { %v2703_v18 = vadd.f32 %v3826_v59, %v4991_v51  ;;  %v2694_v20 = vpop.f32.mrb[141].mxu1 }
 0x73f   : > { %v2695_v2 = vadd.f32 %v4991_v51, %v2694_v20  ;;  %v3827_v13 = vpop.f32.mrb[142].mxu1  ;;  %3868 = vmatprep.mubr.bf16.mxu0 %v2753_v21 }
 0x740   : > { %v2706_v48 = vadd.f32 %v3827_v13, %v4991_v51  ;;  %v2697_v30 = vpop.f32.mrb[143].mxu1  ;;  %3869 = vmatmul.mubr.bf16.gmra.mrb[136].mxu0 %v2754_v23  ;;  %v2739_v47 = vmax.f32 %v2703_v18, 0.0 }
 0x741   : > { %v2698_v54 = vadd.f32 %v4991_v51, %v2697_v30  ;;  %v2737_v62 = vmax.f32 %v2695_v2, 0.0 }
 0x742   : > { %v2740_v25 = vmax.f32 %v2706_v48, 0.0 }
 0x743   : > { %v2738_v41 = vmax.f32 %v2698_v54, 0.0 }
 0x744   : > { %v2756_v26 = vpack.c.bf16 %v2740_v25, %v2739_v47 }
 0x745   : > { %v2755_v24 = vpack.c.bf16 %v2738_v41, %v2737_v62 }
 0x747   : > { %3872 = vmatprep.mubr.bf16.mxu0 %v2755_v24 }
 0x748   : > { %3873 = vmatmul.mubr.bf16.gmra.mrb[140].mxu0 %v2756_v26 }
 0x7e3   : > { %v3846_v27 = vpop.f32.mrb[112].mxu0 }
 0x7e4   : > { %v2871_v57 = vadd.f32 %v3846_v27, %v5031_v5  ;;  %v2862_v51 = vpop.f32.mrb[113].mxu0 }
 0x7e5   : > { %v2863_v49 = vadd.f32 %v5031_v5, %v2862_v51  ;;  %v3847_v35 = vpop.f32.mrb[114].mxu0 }
 0x7e6   : > { %2991 = vst [vmem:[%s5035_s16 + $0x10] sm:$0xff] %v2871_v57  ;;  %v2874_v39 = vadd.f32 %v3847_v35, %v5031_v5  ;;  %v2865_v0 = vpop.f32.mrb[115].mxu0 }
 0x7e7   : > { %2989 = vst [vmem:[%s5035_s16] sm:$0xff] %v2863_v49  ;;  %v2866_v55 = vadd.f32 %v5031_v5, %v2865_v0 }
 0x7e8   : > { %2992 = vst [vmem:[%s5035_s16 + $0x18] sm:$0xff] %v2874_v39 }
 0x7e9   : > { %2990 = vst [vmem:[%s5035_s16 + $0x8] sm:$0xff] %v2866_v55 }
 0x7eb   : > { %v3850_v15 = vpop.f32.mrb[116].mxu0 }
 0x7ec   : > { %v2887_v11 = vadd.f32 %v3850_v15, %v5031_v5  ;;  %v2878_v50 = vpop.f32.mrb[117].mxu0 }
 0x7ed   : > { %v2879_v45 = vadd.f32 %v5031_v5, %v2878_v50  ;;  %v3851_v52 = vpop.f32.mrb[118].mxu0 }
 0x7ee   : > { %2995 = vst [vmem:[%s5035_s16 + $0x30] sm:$0xff] %v2887_v11  ;;  %v2890_v28 = vadd.f32 %v3851_v52, %v5031_v5  ;;  %v2881_v46 = vpop.f32.mrb[119].mxu0 }
 0x7ef   : > { %2993 = vst [vmem:[%s5035_s16 + $0x20] sm:$0xff] %v2879_v45  ;;  %v2882_v53 = vadd.f32 %v5031_v5, %v2881_v46 }
 0x7f0   : > { %2996 = vst [vmem:[%s5035_s16 + $0x38] sm:$0xff] %v2890_v28 }
 0x7f1   : > { %2994 = vst [vmem:[%s5035_s16 + $0x28] sm:$0xff] %v2882_v53 }
 0x7f3   : > { %v3854_v58 = vpop.f32.mrb[120].mxu0 }
 0x7f4   : > { %v2903_v3 = vadd.f32 %v3854_v58, %v5031_v5  ;;  %v2894_v22 = vpop.f32.mrb[121].mxu0 }
 0x7f5   : > { %v2895_v29 = vadd.f32 %v5031_v5, %v2894_v22  ;;  %v3855_v6 = vpop.f32.mrb[122].mxu0 }
 0x7f6   : > { %2999 = vst [vmem:[%s5035_s16 + $0x50] sm:$0xff] %v2903_v3  ;;  %v2906_v32 = vadd.f32 %v3855_v6, %v5031_v5  ;;  %v2897_v12 = vpop.f32.mrb[123].mxu0 }
 0x7f7   : > { %2997 = vst [vmem:[%s5035_s16 + $0x40] sm:$0xff] %v2895_v29  ;;  %v2898_v56 = vadd.f32 %v5031_v5, %v2897_v12 }
 0x7f8   : > { %3000 = vst [vmem:[%s5035_s16 + $0x58] sm:$0xff] %v2906_v32 }
 0x7f9   : > { %2998 = vst [vmem:[%s5035_s16 + $0x48] sm:$0xff] %v2898_v56 }
 0x7fb   : > { %v3858_v9 = vpop.f32.mrb[124].mxu0 }
 0x7fc   : > { %v2919_v60 = vadd.f32 %v3858_v9, %v5031_v5  ;;  %v2910_v37 = vpop.f32.mrb[125].mxu0 }
 0x7fd   : > { %v2911_v10 = vadd.f32 %v5031_v5, %v2910_v37  ;;  %v3859_v7 = vpop.f32.mrb[126].mxu0 }
 0x7fe   : > { %3003 = vst [vmem:[%s5035_s16 + $0x70] sm:$0xff] %v2919_v60  ;;  %v2922_v14 = vadd.f32 %v3859_v7, %v5031_v5  ;;  %v2913_v34 = vpop.f32.mrb[127].mxu0 }
 0x7ff   : > { %3001 = vst [vmem:[%s5035_s16 + $0x60] sm:$0xff] %v2911_v10  ;;  %v2914_v4 = vadd.f32 %v5031_v5, %v2913_v34 }
 0x800   : > { %3004 = vst [vmem:[%s5035_s16 + $0x78] sm:$0xff] %v2922_v14 }
 0x801   : > { %3002 = vst [vmem:[%s5035_s16 + $0x68] sm:$0xff] %v2914_v4 }
 0x803   : > { %v3862_v31 = vpop.f32.mrb[128].mxu0 }
 0x804   : > { %v2935_v33 = vadd.f32 %v3862_v31, %v5031_v5  ;;  %v2926_v8 = vpop.f32.mrb[129].mxu0 }
 0x805   : > { %v2927_v63 = vadd.f32 %v5031_v5, %v2926_v8  ;;  %v3863_v40 = vpop.f32.mrb[130].mxu0 }
 0x806   : > { %3007 = vst [vmem:[%s5035_s16 + $0x90] sm:$0xff] %v2935_v33  ;;  %v2938_v16 = vadd.f32 %v3863_v40, %v5031_v5  ;;  %v2929_v38 = vpop.f32.mrb[131].mxu0 }
 0x807   : > { %3005 = vst [vmem:[%s5035_s16 + $0x80] sm:$0xff] %v2927_v63  ;;  %v2930_v17 = vadd.f32 %v5031_v5, %v2929_v38 }
 0x808   : > { %3008 = vst [vmem:[%s5035_s16 + $0x98] sm:$0xff] %v2938_v16 }
 0x809   : > { %3006 = vst [vmem:[%s5035_s16 + $0x88] sm:$0xff] %v2930_v17 }
 0x80b   : > { %v3866_v19 = vpop.f32.mrb[132].mxu0 }
 0x80c   : > { %v2951_v42 = vadd.f32 %v3866_v19, %v5031_v5  ;;  %v2942_v44 = vpop.f32.mrb[133].mxu0 }
 0x80d   : > { %v2943_v36 = vadd.f32 %v5031_v5, %v2942_v44  ;;  %v3867_v43 = vpop.f32.mrb[134].mxu0 }
 0x80e   : > { %3011 = vst [vmem:[%s5035_s16 + $0xb0] sm:$0xff] %v2951_v42  ;;  %v2954_v1 = vadd.f32 %v3867_v43, %v5031_v5  ;;  %v2945_v61 = vpop.f32.mrb[135].mxu0 }
 0x80f   : > { %3009 = vst [vmem:[%s5035_s16 + $0xa0] sm:$0xff] %v2943_v36  ;;  %v2946_v23 = vadd.f32 %v5031_v5, %v2945_v61 }
 0x810   : > { %3012 = vst [vmem:[%s5035_s16 + $0xb8] sm:$0xff] %v2954_v1 }
 0x811   : > { %3010 = vst [vmem:[%s5035_s16 + $0xa8] sm:$0xff] %v2946_v23 }
 0x813   : > { %v3870_v21 = vpop.f32.mrb[136].mxu0 }
 0x814   : > { %v2967_v59 = vadd.f32 %v3870_v21, %v5031_v5  ;;  %v2958_v18 = vpop.f32.mrb[137].mxu0 }
 0x815   : > { %v2959_v20 = vadd.f32 %v5031_v5, %v2958_v18  ;;  %v3871_v2 = vpop.f32.mrb[138].mxu0 }
 0x816   : > { %3015 = vst [vmem:[%s5035_s16 + $0xd0] sm:$0xff] %v2967_v59  ;;  %v2970_v13 = vadd.f32 %v3871_v2, %v5031_v5  ;;  %v2961_v48 = vpop.f32.mrb[139].mxu0 }
 0x817   : > { %3013 = vst [vmem:[%s5035_s16 + $0xc0] sm:$0xff] %v2959_v20  ;;  %v2962_v30 = vadd.f32 %v5031_v5, %v2961_v48 }
 0x818   : > { %3016 = vst [vmem:[%s5035_s16 + $0xd8] sm:$0xff] %v2970_v13 }
 0x819   : > { %3014 = vst [vmem:[%s5035_s16 + $0xc8] sm:$0xff] %v2962_v30 }
 0x81b   : > { %v3874_v54 = vpop.f32.mrb[140].mxu0 }
 0x81c   : > { %v2983_v47 = vadd.f32 %v3874_v54, %v5031_v5  ;;  %v2974_v25 = vpop.f32.mrb[141].mxu0 }
 0x81d   : > { %v2975_v62 = vadd.f32 %v5031_v5, %v2974_v25  ;;  %v3875_v41 = vpop.f32.mrb[142].mxu0 }
 0x81e   : > { %3019 = vst [vmem:[%s5035_s16 + $0xf0] sm:$0xff] %v2983_v47  ;;  %v2986_v26 = vadd.f32 %v3875_v41, %v5031_v5  ;;  %v2977_v24 = vpop.f32.mrb[143].mxu0 }
 0x81f   : > { %3017 = vst [vmem:[%s5035_s16 + $0xe0] sm:$0xff] %v2975_v62  ;;  %v2978_v27 = vadd.f32 %v5031_v5, %v2977_v24 }
 0x820   : > { %3020 = vst [vmem:[%s5035_s16 + $0xf8] sm:$0xff] %v2986_v26 }
 0x821   : > { %3018 = vst [vmem:[%s5035_s16 + $0xe8] sm:$0xff] %v2978_v27 }
 0x822   : > { %3998 = shalt.err (!%p3995_p3)
}
 0x823   : > { %s3999_s20 = scalar_lea.hbm %s5100_s26, 4096  ;;  %s4003_s15 = scalar_lea.hbm %s5163_s12, 8192 }
 0x824   : > { %p4000_p4 = scmp.ne.s32.totalorder %s5100_s26, %s3999_s20  ;;  %p4004_p9 = scmp.lt.u32.totalorder %s5100_s26, %s5163_s12 }
 0x825   : > { %p4005_p10 = scmp.lt.u32.totalorder %s4003_s15, %s3999_s20  ;;  %p4007_p12 = scmp.lt.u32.totalorder %s3999_s20, %s5100_s26 }
 0x826   : > { %p4001_p7 = pnand %p4000_p4, %p4155_p5 }
 0x827   : > { %p4006_p11 = por %p4005_p10, %p4004_p9 }
 0x828   : > { %p4002_p8 = pneg %p4001_p7 }
 0x829   : > { %p4008_p13 = por %p4007_p12, %p4006_p11 }
 0x82b   : > { %p4009_p0 = pnand %p4008_p13, %p4002_p8 }
 0x82d   : > { %4012 = shalt.err (!%p4009_p0)
}
 0x82e   : > { %s4050_s28 = smov 128   ;;  %s4051_s19 = smov 8  }
 0x82f   : > { %3880 = dma.vmem_to_hbm [thread:$0]  (%p4155_p5), %s5102_s18, 4096, %s5100_s26, %s5110_s25, %s4050_s28, %s4050_s28, %s4051_s19  }
 0x830 PF: > { %p3886_p1 = scmp.ge.s32.totalorder %s4047_s24, 2  ;;  %s3050_s0 = sand.u32 1, %s4035_s21  }
 0x831   : > { %s3051_s20 = scalar_lea.sflag [#allocation3], %s3050_s0 }
 0x832   : > { %p3883_p2 = pnand %p3886_p1, %p4159_p6 }
 0x834   : > { %4030 = dma.done.wait (!%p3883_p2), %s3051_s20, 4096  }
 0x835   : > { %4032 = vsyncadd (!%p3883_p2), %s3051_s20, 4294963200  ;;  %p22_p3 = scmp.ge.s32.totalorder %s4142_s27, 4   ;;  %s5208_s21 = smov %s4039_s22 }
 0x836   : > { %s5209_s22 = smov %s4043_s23  ;;  %s5210_s23 = smov %s4153_s30 }
 0x837   : > { %s5211_s24 = smov %s4142_s27  ;;  %24 = sbr.rel (!%p22_p3) target bundleno = 5 (0x5), region = 109 }
 0x83e   :  { %3056 = vsyncpa [#allocation3], 1 }
 0x83f   :  { %3058 = vsyncpa [#allocation3 + $0x1], 1 }

</bundles_post_ra>
